<compile_context>
chip_gen: v5e
topology: v5e:2x2
jax: 0.10.0
libtpu: 0.0.40
codegen_flags: <defaults>
</compile_context>

<pallas_src>
import functools

import jax
import jax.numpy as jnp
from jax.experimental import pallas as pl
from jax.experimental.pallas import tpu as pltpu


def rnnlm_kernel(tok_ref, emb_ref, w_ih_ref, w_hh_ref, b_ref, w_proj_ref, b_proj_ref,
                 out_ref, x_buf, gather_sem, hs_ref, h_ref, c_ref,
                 *, block_t, batch, hidden):
    B, H = batch, hidden
    rows = block_t * B
    blk = pl.program_id(0)

    @pl.when(blk == 0)
    def _init():
        h_ref[...] = jnp.zeros_like(h_ref)
        c_ref[...] = jnp.zeros_like(c_ref)

    # --- Embedding gather: per-row HBM->VMEM DMAs (issue all, then wait all). ---
    # Token ids come from SMEM (scalar prefetch); emb stays in HBM (pl.ANY).
    base = blk * rows
    copies = []
    for r in range(rows):
        tok = tok_ref[base + r]
        cp = pltpu.make_async_copy(emb_ref.at[pl.ds(tok, 1), :],
                                   x_buf.at[pl.ds(r, 1), :],
                                   gather_sem.at[r])
        cp.start()
        copies.append(cp)
    for cp in copies:
        cp.wait()

    # Hoisted weight loads (once per grid step).
    w_ih = w_ih_ref[...]          # (E, 4H) bf16
    w_hh = w_hh_ref[...]          # (H, 4H) bf16
    bias = b_ref[...]             # (1, 4H) f32

    # Input-side gates for the whole block in one lane-dense matmul, bias folded in.
    x_block = x_buf[...].astype(jnp.bfloat16)                       # (rows, E)
    xg = jnp.dot(x_block, w_ih, preferred_element_type=jnp.float32) + bias  # (rows, 4H)

    # Lane mask selecting the g (cell) gate columns [2H, 3H) of the fused 4H axis.
    lane = jax.lax.broadcasted_iota(jnp.int32, (B, 4 * H), 1)
    g_mask = (lane >= 2 * H) & (lane < 3 * H)

    # Serial LSTM recurrence (PyTorch gate order [i, f, g, o] along the 4H axis).
    h = h_ref[...]
    c = c_ref[...]
    for tt in range(block_t):
        pre = xg[tt * B:(tt + 1) * B, :] + jnp.dot(
            h.astype(jnp.bfloat16), w_hh, preferred_element_type=jnp.float32)  # (B, 4H)
        act = jnp.where(g_mask, jnp.tanh(pre), jax.nn.sigmoid(pre))            # fused EUP
        i_g = act[:, 0 * H:1 * H]
        f_g = act[:, 1 * H:2 * H]
        g_g = act[:, 2 * H:3 * H]
        o_g = act[:, 3 * H:4 * H]
        c = f_g * c + i_g * g_g
        h = o_g * jnp.tanh(c)
        hs_ref[tt * B:(tt + 1) * B, :] = h          # stage h_t into VMEM scratch
    h_ref[...] = h
    c_ref[...] = c

    # Hoisted projection: one (rows, H) @ (H, Vpad) matmul + lane-dense store.
    out_ref[...] = (jnp.dot(hs_ref[...].astype(jnp.bfloat16), w_proj_ref[...],
                            preferred_element_type=jnp.float32)
                    + b_proj_ref[...])


def rnnlm_forward(tokens, params, *, block_t=None):
    T, B = tokens.shape
    V, E = params["emb"].shape
    H = params["w_hh"].shape[0]

    if block_t is None or T % block_t != 0:
        block_t = T                                  # toy sizes: whole T in one grid step
    n_blocks = T // block_t
    rows = block_t * B
    assert n_blocks == 1 or rows % 8 == 0, "block rows must tile sublanes"

    V_pad = ((V + 127) // 128) * 128                 # lane-dense output

    tokens_flat = tokens.reshape(T * B).astype(jnp.int32)   # t-major, b-minor

    bf16 = jnp.bfloat16
    emb = params["emb"]                              # f32, HBM-resident (DMA gather)
    w_ih = params["w_ih"].astype(bf16)               # (E, 4H)
    w_hh = params["w_hh"].astype(bf16)               # (H, 4H)
    b = params["b"]                                  # (1, 4H) f32
    w_proj = params["w_proj"].astype(bf16)           # (H, V)
    b_proj = params["b_proj"]                        # (1, V) f32
    if V_pad != V:
        w_proj = jnp.pad(w_proj, ((0, 0), (0, V_pad - V)))
        b_proj = jnp.pad(b_proj, ((0, 0), (0, V_pad - V)))

    grid_spec = pltpu.PrefetchScalarGridSpec(
        num_scalar_prefetch=1,
        grid=(n_blocks,),
        in_specs=[
            pl.BlockSpec(memory_space=pl.ANY),                    # emb stays in HBM
            pl.BlockSpec((E, 4 * H), lambda i, tok: (0, 0)),      # w_ih
            pl.BlockSpec((H, 4 * H), lambda i, tok: (0, 0)),      # w_hh
            pl.BlockSpec((1, 4 * H), lambda i, tok: (0, 0)),      # bias
            pl.BlockSpec((H, V_pad), lambda i, tok: (0, 0)),      # w_proj
            pl.BlockSpec((1, V_pad), lambda i, tok: (0, 0)),      # b_proj
        ],
        out_specs=pl.BlockSpec((rows, V_pad), lambda i, tok: (i, 0)),
        scratch_shapes=[
            pltpu.VMEM((rows, E), jnp.float32),      # gathered embedding rows
            pltpu.SemaphoreType.DMA((rows,)),        # per-row gather semaphores
            pltpu.VMEM((rows, H), jnp.float32),      # per-timestep h staging
            pltpu.VMEM((B, H), jnp.float32),         # h carry
            pltpu.VMEM((B, H), jnp.float32),         # c carry
        ],
    )

    out = pl.pallas_call(
        functools.partial(rnnlm_kernel, block_t=block_t, batch=B, hidden=H),
        grid_spec=grid_spec,
        out_shape=jax.ShapeDtypeStruct((T * B, V_pad), jnp.float32),
        compiler_params=pltpu.CompilerParams(
            dimension_semantics=("arbitrary",),      # T axis carries h/c -> sequential
            vmem_limit_bytes=32 * 1024 * 1024),
    )(tokens_flat, emb, w_ih, w_hh, b, w_proj, b_proj)
    return out[:, :V]


def init_params(key, vocab_size, embed_size, hidden_size):
    ks = jax.random.split(key, 7)
    s = 1.0 / jnp.sqrt(hidden_size)
    emb = jax.random.normal(ks[0], (vocab_size, embed_size), jnp.float32)
    # Fused gate weights, columns ordered [i, f, g, o] (PyTorch order) along 4H.
    w_ih = jax.random.uniform(ks[1], (embed_size, 4 * hidden_size), jnp.float32, -s, s)
    w_hh = jax.random.uniform(ks[2], (hidden_size, 4 * hidden_size), jnp.float32, -s, s)
    b_ih = jax.random.uniform(ks[3], (1, 4 * hidden_size), jnp.float32, -s, s)
    b_hh = jax.random.uniform(ks[4], (1, 4 * hidden_size), jnp.float32, -s, s)
    w_proj = jax.random.uniform(ks[5], (hidden_size, vocab_size), jnp.float32, -s, s)
    b_proj = jax.random.uniform(ks[6], (1, vocab_size), jnp.float32, -s, s)
    return {
        "emb": emb,
        "w_ih": w_ih,
        "w_hh": w_hh,
        "b": b_ih + b_hh,          # PyTorch adds b_ih + b_hh
        "w_proj": w_proj,
        "b_proj": b_proj,
    }


def rnnlm_reference(tokens, params):
    # Pure-JAX fp32 reference (semantics of the PyTorch module).
    T, B = tokens.shape
    H = params["w_hh"].shape[0]
    x = params["emb"][tokens]                       # (T, B, E)
    h = jnp.zeros((B, H), jnp.float32)
    c = jnp.zeros((B, H), jnp.float32)
    outs = []
    for t in range(T):
        pre = x[t] @ params["w_ih"] + h @ params["w_hh"] + params["b"]   # (B, 4H)
        i_g = jax.nn.sigmoid(pre[:, 0 * H:1 * H])
        f_g = jax.nn.sigmoid(pre[:, 1 * H:2 * H])
        g_g = jnp.tanh(pre[:, 2 * H:3 * H])
        o_g = jax.nn.sigmoid(pre[:, 3 * H:4 * H])
        c = f_g * c + i_g * g_g
        h = o_g * jnp.tanh(c)
        outs.append(h @ params["w_proj"] + params["b_proj"])
    return jnp.stack(outs, 0).reshape(T * B, -1)


if __name__ == "__main__":
    VOCAB_SIZE = 64
    EMBED_SIZE = 32
    HIDDEN_SIZE = 32
    SEQ_LEN = 8
    BATCH = 2

    key = jax.random.PRNGKey(0)
    k_tok, k_par = jax.random.split(key)
    tokens = jax.random.randint(k_tok, (SEQ_LEN, BATCH), 0, VOCAB_SIZE, dtype=jnp.int32)
    params = init_params(k_par, VOCAB_SIZE, EMBED_SIZE, HIDDEN_SIZE)

    logits = rnnlm_forward(tokens, params)
    jax.block_until_ready(logits)

    ref = rnnlm_reference(tokens, params)
    assert logits.shape == (SEQ_LEN * BATCH, VOCAB_SIZE)
    # bf16 MXU operands vs fp32 reference -> slightly looser tolerance.
    assert jnp.allclose(logits, ref, rtol=2e-2, atol=2e-2), \
        float(jnp.max(jnp.abs(logits - ref)))

    print("KERNEL_OK")
</pallas_src>

<mosaic_0001>
module attributes {stable_mosaic.version = 11 : i64} {
  func.func @rnnlm_kernel(%arg0: i32, %arg1: memref<16xi32, #tpu.memory_space<smem>>, %arg2: memref<64x32xf32, #tpu.memory_space<any>>, %arg3: memref<32x128xbf16, #tpu.memory_space<vmem>>, %arg4: memref<32x128xbf16, #tpu.memory_space<vmem>>, %arg5: memref<1x128xf32, #tpu.memory_space<vmem>>, %arg6: memref<32x128xbf16, #tpu.memory_space<vmem>>, %arg7: memref<1x128xf32, #tpu.memory_space<vmem>>, %arg8: memref<16x128xf32, #tpu.memory_space<vmem>>, %arg9: memref<16x32xf32, #tpu.memory_space<vmem>>, %arg10: memref<16x!tpu.dma_semaphore, #tpu.memory_space<semaphore_mem>>, %arg11: memref<16x32xf32, #tpu.memory_space<vmem>>, %arg12: memref<2x32xf32, #tpu.memory_space<vmem>>, %arg13: memref<2x32xf32, #tpu.memory_space<vmem>>) attributes {dimension_semantics = [#tpu.dimension_semantics<arbitrary>], iteration_bounds = array<i64: 1>, scalar_prefetch = 1 : i64, scratch_operands = 5 : i64, tpu.core_type = #tpu.core_type<tc>, window_params = [{}, {pipeline_mode = #tpu.pipeline_mode<synchronous>, transform_indices = @transform_1, window_bounds = array<i64: 32, 128>}, {pipeline_mode = #tpu.pipeline_mode<synchronous>, transform_indices = @transform_2, window_bounds = array<i64: 32, 128>}, {pipeline_mode = #tpu.pipeline_mode<synchronous>, transform_indices = @transform_3, window_bounds = array<i64: 1, 128>}, {pipeline_mode = #tpu.pipeline_mode<synchronous>, transform_indices = @transform_4, window_bounds = array<i64: 32, 128>}, {pipeline_mode = #tpu.pipeline_mode<synchronous>, transform_indices = @transform_5, window_bounds = array<i64: 1, 128>}, {transform_indices = @transform_6, window_bounds = array<i64: 16, 128>}]} {
    %c0_i32 = arith.constant 0 : i32
    %0 = arith.cmpi eq, %arg0, %c0_i32 : i32
    %1 = arith.extui %0 : i1 to i32
    %c0_i32_0 = arith.constant 0 : i32
    %2 = arith.cmpi ne, %1, %c0_i32_0 : i32
    scf.if %2 {
      %cst_179 = arith.constant 0.000000e+00 : f32
      %374 = vector.broadcast %cst_179 : f32 to vector<2x32xf32>
      %c0_180 = arith.constant 0 : index
      %c0_181 = arith.constant 0 : index
      %375 = vector.load %arg12[%c0_180, %c0_181] : memref<2x32xf32, #tpu.memory_space<vmem>>, vector<2x32xf32>
      tpu.vector_store %arg12[%c0_180, %c0_181], %374 {strides = array<i32>} : memref<2x32xf32, #tpu.memory_space<vmem>>, vector<2x32xf32>,
      %cst_182 = arith.constant 0.000000e+00 : f32
      %376 = vector.broadcast %cst_182 : f32 to vector<2x32xf32>
      %c0_183 = arith.constant 0 : index
      %c0_184 = arith.constant 0 : index
      %377 = vector.load %arg13[%c0_183, %c0_184] : memref<2x32xf32, #tpu.memory_space<vmem>>, vector<2x32xf32>
      tpu.vector_store %arg13[%c0_183, %c0_184], %376 {strides = array<i32>} : memref<2x32xf32, #tpu.memory_space<vmem>>, vector<2x32xf32>,
    } else {
    }
    %c16_i32 = arith.constant 16 : i32
    %3 = arith.muli %arg0, %c16_i32 : i32
    %c0_i32_1 = arith.constant 0 : i32
    %4 = arith.addi %3, %c0_i32_1 : i32
    %5 = arith.index_cast %4 : i32 to index
    %6 = memref.load %arg1[%5] : memref<16xi32, #tpu.memory_space<smem>>
    %c0_i32_2 = arith.constant 0 : i32
    %c0_i32_3 = arith.constant 0 : i32
    %7 = tpu.memref_slice %arg2[%6, %c0_i32_3] : memref<64x32xf32, #tpu.memory_space<any>> -> memref<1x32xf32, #tpu.memory_space<any>>
    %c0_i32_4 = arith.constant 0 : i32
    %c0_i32_5 = arith.constant 0 : i32
    %8 = tpu.memref_slice %arg9[%c0_i32_4, %c0_i32_5] : memref<16x32xf32, #tpu.memory_space<vmem>> -> memref<1x32xf32, #tpu.memory_space<vmem>>
    %9 = tpu.memref_slice %arg10[%c0_i32_2] : memref<16x!tpu.dma_semaphore, #tpu.memory_space<semaphore_mem>> -> memref<1x!tpu.dma_semaphore, #tpu.memory_space<semaphore_mem>>
    %10 = tpu.memref_squeeze %9 : memref<1x!tpu.dma_semaphore, #tpu.memory_space<semaphore_mem>> -> memref<!tpu.dma_semaphore, #tpu.memory_space<semaphore_mem>>
    tpu.enqueue_dma source(%7 : memref<1x32xf32, #tpu.memory_space<any>>) target(%8 : memref<1x32xf32, #tpu.memory_space<vmem>>) target_semaphore(%10 : memref<!tpu.dma_semaphore, #tpu.memory_space<semaphore_mem>>)
    %c1_i32 = arith.constant 1 : i32
    %11 = arith.addi %3, %c1_i32 : i32
    %12 = arith.index_cast %11 : i32 to index
    %13 = memref.load %arg1[%12] : memref<16xi32, #tpu.memory_space<smem>>
    %c1_i32_6 = arith.constant 1 : i32
    %c0_i32_7 = arith.constant 0 : i32
    %14 = tpu.memref_slice %arg2[%13, %c0_i32_7] : memref<64x32xf32, #tpu.memory_space<any>> -> memref<1x32xf32, #tpu.memory_space<any>>
    %c1_i32_8 = arith.constant 1 : i32
    %c0_i32_9 = arith.constant 0 : i32
    %15 = tpu.memref_slice %arg9[%c1_i32_8, %c0_i32_9] : memref<16x32xf32, #tpu.memory_space<vmem>> -> memref<1x32xf32, #tpu.memory_space<vmem>>
    %16 = tpu.memref_slice %arg10[%c1_i32_6] : memref<16x!tpu.dma_semaphore, #tpu.memory_space<semaphore_mem>> -> memref<1x!tpu.dma_semaphore, #tpu.memory_space<semaphore_mem>>
    %17 = tpu.memref_squeeze %16 : memref<1x!tpu.dma_semaphore, #tpu.memory_space<semaphore_mem>> -> memref<!tpu.dma_semaphore, #tpu.memory_space<semaphore_mem>>
    tpu.enqueue_dma source(%14 : memref<1x32xf32, #tpu.memory_space<any>>) target(%15 : memref<1x32xf32, #tpu.memory_space<vmem>>) target_semaphore(%17 : memref<!tpu.dma_semaphore, #tpu.memory_space<semaphore_mem>>)
    %c2_i32 = arith.constant 2 : i32
    %18 = arith.addi %3, %c2_i32 : i32
    %19 = arith.index_cast %18 : i32 to index
    %20 = memref.load %arg1[%19] : memref<16xi32, #tpu.memory_space<smem>>
    %c2_i32_10 = arith.constant 2 : i32
    %c0_i32_11 = arith.constant 0 : i32
    %21 = tpu.memref_slice %arg2[%20, %c0_i32_11] : memref<64x32xf32, #tpu.memory_space<any>> -> memref<1x32xf32, #tpu.memory_space<any>>
    %c2_i32_12 = arith.constant 2 : i32
    %c0_i32_13 = arith.constant 0 : i32
    %22 = tpu.memref_slice %arg9[%c2_i32_12, %c0_i32_13] : memref<16x32xf32, #tpu.memory_space<vmem>> -> memref<1x32xf32, #tpu.memory_space<vmem>>
    %23 = tpu.memref_slice %arg10[%c2_i32_10] : memref<16x!tpu.dma_semaphore, #tpu.memory_space<semaphore_mem>> -> memref<1x!tpu.dma_semaphore, #tpu.memory_space<semaphore_mem>>
    %24 = tpu.memref_squeeze %23 : memref<1x!tpu.dma_semaphore, #tpu.memory_space<semaphore_mem>> -> memref<!tpu.dma_semaphore, #tpu.memory_space<semaphore_mem>>
    tpu.enqueue_dma source(%21 : memref<1x32xf32, #tpu.memory_space<any>>) target(%22 : memref<1x32xf32, #tpu.memory_space<vmem>>) target_semaphore(%24 : memref<!tpu.dma_semaphore, #tpu.memory_space<semaphore_mem>>)
    %c3_i32 = arith.constant 3 : i32
    %25 = arith.addi %3, %c3_i32 : i32
    %26 = arith.index_cast %25 : i32 to index
    %27 = memref.load %arg1[%26] : memref<16xi32, #tpu.memory_space<smem>>
    %c3_i32_14 = arith.constant 3 : i32
    %c0_i32_15 = arith.constant 0 : i32
    %28 = tpu.memref_slice %arg2[%27, %c0_i32_15] : memref<64x32xf32, #tpu.memory_space<any>> -> memref<1x32xf32, #tpu.memory_space<any>>
    %c3_i32_16 = arith.constant 3 : i32
    %c0_i32_17 = arith.constant 0 : i32
    %29 = tpu.memref_slice %arg9[%c3_i32_16, %c0_i32_17] : memref<16x32xf32, #tpu.memory_space<vmem>> -> memref<1x32xf32, #tpu.memory_space<vmem>>
    %30 = tpu.memref_slice %arg10[%c3_i32_14] : memref<16x!tpu.dma_semaphore, #tpu.memory_space<semaphore_mem>> -> memref<1x!tpu.dma_semaphore, #tpu.memory_space<semaphore_mem>>
    %31 = tpu.memref_squeeze %30 : memref<1x!tpu.dma_semaphore, #tpu.memory_space<semaphore_mem>> -> memref<!tpu.dma_semaphore, #tpu.memory_space<semaphore_mem>>
    tpu.enqueue_dma source(%28 : memref<1x32xf32, #tpu.memory_space<any>>) target(%29 : memref<1x32xf32, #tpu.memory_space<vmem>>) target_semaphore(%31 : memref<!tpu.dma_semaphore, #tpu.memory_space<semaphore_mem>>)
    %c4_i32 = arith.constant 4 : i32
    %32 = arith.addi %3, %c4_i32 : i32
    %33 = arith.index_cast %32 : i32 to index
    %34 = memref.load %arg1[%33] : memref<16xi32, #tpu.memory_space<smem>>
    %c4_i32_18 = arith.constant 4 : i32
    %c0_i32_19 = arith.constant 0 : i32
    %35 = tpu.memref_slice %arg2[%34, %c0_i32_19] : memref<64x32xf32, #tpu.memory_space<any>> -> memref<1x32xf32, #tpu.memory_space<any>>
    %c4_i32_20 = arith.constant 4 : i32
    %c0_i32_21 = arith.constant 0 : i32
    %36 = tpu.memref_slice %arg9[%c4_i32_20, %c0_i32_21] : memref<16x32xf32, #tpu.memory_space<vmem>> -> memref<1x32xf32, #tpu.memory_space<vmem>>
    %37 = tpu.memref_slice %arg10[%c4_i32_18] : memref<16x!tpu.dma_semaphore, #tpu.memory_space<semaphore_mem>> -> memref<1x!tpu.dma_semaphore, #tpu.memory_space<semaphore_mem>>
    %38 = tpu.memref_squeeze %37 : memref<1x!tpu.dma_semaphore, #tpu.memory_space<semaphore_mem>> -> memref<!tpu.dma_semaphore, #tpu.memory_space<semaphore_mem>>
    tpu.enqueue_dma source(%35 : memref<1x32xf32, #tpu.memory_space<any>>) target(%36 : memref<1x32xf32, #tpu.memory_space<vmem>>) target_semaphore(%38 : memref<!tpu.dma_semaphore, #tpu.memory_space<semaphore_mem>>)
    %c5_i32 = arith.constant 5 : i32
    %39 = arith.addi %3, %c5_i32 : i32
    %40 = arith.index_cast %39 : i32 to index
    %41 = memref.load %arg1[%40] : memref<16xi32, #tpu.memory_space<smem>>
    %c5_i32_22 = arith.constant 5 : i32
    %c0_i32_23 = arith.constant 0 : i32
    %42 = tpu.memref_slice %arg2[%41, %c0_i32_23] : memref<64x32xf32, #tpu.memory_space<any>> -> memref<1x32xf32, #tpu.memory_space<any>>
    %c5_i32_24 = arith.constant 5 : i32
    %c0_i32_25 = arith.constant 0 : i32
    %43 = tpu.memref_slice %arg9[%c5_i32_24, %c0_i32_25] : memref<16x32xf32, #tpu.memory_space<vmem>> -> memref<1x32xf32, #tpu.memory_space<vmem>>
    %44 = tpu.memref_slice %arg10[%c5_i32_22] : memref<16x!tpu.dma_semaphore, #tpu.memory_space<semaphore_mem>> -> memref<1x!tpu.dma_semaphore, #tpu.memory_space<semaphore_mem>>
    %45 = tpu.memref_squeeze %44 : memref<1x!tpu.dma_semaphore, #tpu.memory_space<semaphore_mem>> -> memref<!tpu.dma_semaphore, #tpu.memory_space<semaphore_mem>>
    tpu.enqueue_dma source(%42 : memref<1x32xf32, #tpu.memory_space<any>>) target(%43 : memref<1x32xf32, #tpu.memory_space<vmem>>) target_semaphore(%45 : memref<!tpu.dma_semaphore, #tpu.memory_space<semaphore_mem>>)
    %c6_i32 = arith.constant 6 : i32
    %46 = arith.addi %3, %c6_i32 : i32
    %47 = arith.index_cast %46 : i32 to index
    %48 = memref.load %arg1[%47] : memref<16xi32, #tpu.memory_space<smem>>
    %c6_i32_26 = arith.constant 6 : i32
    %c0_i32_27 = arith.constant 0 : i32
    %49 = tpu.memref_slice %arg2[%48, %c0_i32_27] : memref<64x32xf32, #tpu.memory_space<any>> -> memref<1x32xf32, #tpu.memory_space<any>>
    %c6_i32_28 = arith.constant 6 : i32
    %c0_i32_29 = arith.constant 0 : i32
    %50 = tpu.memref_slice %arg9[%c6_i32_28, %c0_i32_29] : memref<16x32xf32, #tpu.memory_space<vmem>> -> memref<1x32xf32, #tpu.memory_space<vmem>>
    %51 = tpu.memref_slice %arg10[%c6_i32_26] : memref<16x!tpu.dma_semaphore, #tpu.memory_space<semaphore_mem>> -> memref<1x!tpu.dma_semaphore, #tpu.memory_space<semaphore_mem>>
    %52 = tpu.memref_squeeze %51 : memref<1x!tpu.dma_semaphore, #tpu.memory_space<semaphore_mem>> -> memref<!tpu.dma_semaphore, #tpu.memory_space<semaphore_mem>>
    tpu.enqueue_dma source(%49 : memref<1x32xf32, #tpu.memory_space<any>>) target(%50 : memref<1x32xf32, #tpu.memory_space<vmem>>) target_semaphore(%52 : memref<!tpu.dma_semaphore, #tpu.memory_space<semaphore_mem>>)
    %c7_i32 = arith.constant 7 : i32
    %53 = arith.addi %3, %c7_i32 : i32
    %54 = arith.index_cast %53 : i32 to index
    %55 = memref.load %arg1[%54] : memref<16xi32, #tpu.memory_space<smem>>
    %c7_i32_30 = arith.constant 7 : i32
    %c0_i32_31 = arith.constant 0 : i32
    %56 = tpu.memref_slice %arg2[%55, %c0_i32_31] : memref<64x32xf32, #tpu.memory_space<any>> -> memref<1x32xf32, #tpu.memory_space<any>>
    %c7_i32_32 = arith.constant 7 : i32
    %c0_i32_33 = arith.constant 0 : i32
    %57 = tpu.memref_slice %arg9[%c7_i32_32, %c0_i32_33] : memref<16x32xf32, #tpu.memory_space<vmem>> -> memref<1x32xf32, #tpu.memory_space<vmem>>
    %58 = tpu.memref_slice %arg10[%c7_i32_30] : memref<16x!tpu.dma_semaphore, #tpu.memory_space<semaphore_mem>> -> memref<1x!tpu.dma_semaphore, #tpu.memory_space<semaphore_mem>>
    %59 = tpu.memref_squeeze %58 : memref<1x!tpu.dma_semaphore, #tpu.memory_space<semaphore_mem>> -> memref<!tpu.dma_semaphore, #tpu.memory_space<semaphore_mem>>
    tpu.enqueue_dma source(%56 : memref<1x32xf32, #tpu.memory_space<any>>) target(%57 : memref<1x32xf32, #tpu.memory_space<vmem>>) target_semaphore(%59 : memref<!tpu.dma_semaphore, #tpu.memory_space<semaphore_mem>>)
    %c8_i32 = arith.constant 8 : i32
    %60 = arith.addi %3, %c8_i32 : i32
    %61 = arith.index_cast %60 : i32 to index
    %62 = memref.load %arg1[%61] : memref<16xi32, #tpu.memory_space<smem>>
    %c8_i32_34 = arith.constant 8 : i32
    %c0_i32_35 = arith.constant 0 : i32
    %63 = tpu.memref_slice %arg2[%62, %c0_i32_35] : memref<64x32xf32, #tpu.memory_space<any>> -> memref<1x32xf32, #tpu.memory_space<any>>
    %c8_i32_36 = arith.constant 8 : i32
    %c0_i32_37 = arith.constant 0 : i32
    %64 = tpu.memref_slice %arg9[%c8_i32_36, %c0_i32_37] : memref<16x32xf32, #tpu.memory_space<vmem>> -> memref<1x32xf32, #tpu.memory_space<vmem>>
    %65 = tpu.memref_slice %arg10[%c8_i32_34] : memref<16x!tpu.dma_semaphore, #tpu.memory_space<semaphore_mem>> -> memref<1x!tpu.dma_semaphore, #tpu.memory_space<semaphore_mem>>
    %66 = tpu.memref_squeeze %65 : memref<1x!tpu.dma_semaphore, #tpu.memory_space<semaphore_mem>> -> memref<!tpu.dma_semaphore, #tpu.memory_space<semaphore_mem>>
    tpu.enqueue_dma source(%63 : memref<1x32xf32, #tpu.memory_space<any>>) target(%64 : memref<1x32xf32, #tpu.memory_space<vmem>>) target_semaphore(%66 : memref<!tpu.dma_semaphore, #tpu.memory_space<semaphore_mem>>)
    %c9_i32 = arith.constant 9 : i32
    %67 = arith.addi %3, %c9_i32 : i32
    %68 = arith.index_cast %67 : i32 to index
    %69 = memref.load %arg1[%68] : memref<16xi32, #tpu.memory_space<smem>>
    %c9_i32_38 = arith.constant 9 : i32
    %c0_i32_39 = arith.constant 0 : i32
    %70 = tpu.memref_slice %arg2[%69, %c0_i32_39] : memref<64x32xf32, #tpu.memory_space<any>> -> memref<1x32xf32, #tpu.memory_space<any>>
    %c9_i32_40 = arith.constant 9 : i32
    %c0_i32_41 = arith.constant 0 : i32
    %71 = tpu.memref_slice %arg9[%c9_i32_40, %c0_i32_41] : memref<16x32xf32, #tpu.memory_space<vmem>> -> memref<1x32xf32, #tpu.memory_space<vmem>>
    %72 = tpu.memref_slice %arg10[%c9_i32_38] : memref<16x!tpu.dma_semaphore, #tpu.memory_space<semaphore_mem>> -> memref<1x!tpu.dma_semaphore, #tpu.memory_space<semaphore_mem>>
    %73 = tpu.memref_squeeze %72 : memref<1x!tpu.dma_semaphore, #tpu.memory_space<semaphore_mem>> -> memref<!tpu.dma_semaphore, #tpu.memory_space<semaphore_mem>>
    tpu.enqueue_dma source(%70 : memref<1x32xf32, #tpu.memory_space<any>>) target(%71 : memref<1x32xf32, #tpu.memory_space<vmem>>) target_semaphore(%73 : memref<!tpu.dma_semaphore, #tpu.memory_space<semaphore_mem>>)
    %c10_i32 = arith.constant 10 : i32
    %74 = arith.addi %3, %c10_i32 : i32
    %75 = arith.index_cast %74 : i32 to index
    %76 = memref.load %arg1[%75] : memref<16xi32, #tpu.memory_space<smem>>
    %c10_i32_42 = arith.constant 10 : i32
    %c0_i32_43 = arith.constant 0 : i32
    %77 = tpu.memref_slice %arg2[%76, %c0_i32_43] : memref<64x32xf32, #tpu.memory_space<any>> -> memref<1x32xf32, #tpu.memory_space<any>>
    %c10_i32_44 = arith.constant 10 : i32
    %c0_i32_45 = arith.constant 0 : i32
    %78 = tpu.memref_slice %arg9[%c10_i32_44, %c0_i32_45] : memref<16x32xf32, #tpu.memory_space<vmem>> -> memref<1x32xf32, #tpu.memory_space<vmem>>
    %79 = tpu.memref_slice %arg10[%c10_i32_42] : memref<16x!tpu.dma_semaphore, #tpu.memory_space<semaphore_mem>> -> memref<1x!tpu.dma_semaphore, #tpu.memory_space<semaphore_mem>>
    %80 = tpu.memref_squeeze %79 : memref<1x!tpu.dma_semaphore, #tpu.memory_space<semaphore_mem>> -> memref<!tpu.dma_semaphore, #tpu.memory_space<semaphore_mem>>
    tpu.enqueue_dma source(%77 : memref<1x32xf32, #tpu.memory_space<any>>) target(%78 : memref<1x32xf32, #tpu.memory_space<vmem>>) target_semaphore(%80 : memref<!tpu.dma_semaphore, #tpu.memory_space<semaphore_mem>>)
    %c11_i32 = arith.constant 11 : i32
    %81 = arith.addi %3, %c11_i32 : i32
    %82 = arith.index_cast %81 : i32 to index
    %83 = memref.load %arg1[%82] : memref<16xi32, #tpu.memory_space<smem>>
    %c11_i32_46 = arith.constant 11 : i32
    %c0_i32_47 = arith.constant 0 : i32
    %84 = tpu.memref_slice %arg2[%83, %c0_i32_47] : memref<64x32xf32, #tpu.memory_space<any>> -> memref<1x32xf32, #tpu.memory_space<any>>
    %c11_i32_48 = arith.constant 11 : i32
    %c0_i32_49 = arith.constant 0 : i32
    %85 = tpu.memref_slice %arg9[%c11_i32_48, %c0_i32_49] : memref<16x32xf32, #tpu.memory_space<vmem>> -> memref<1x32xf32, #tpu.memory_space<vmem>>
    %86 = tpu.memref_slice %arg10[%c11_i32_46] : memref<16x!tpu.dma_semaphore, #tpu.memory_space<semaphore_mem>> -> memref<1x!tpu.dma_semaphore, #tpu.memory_space<semaphore_mem>>
    %87 = tpu.memref_squeeze %86 : memref<1x!tpu.dma_semaphore, #tpu.memory_space<semaphore_mem>> -> memref<!tpu.dma_semaphore, #tpu.memory_space<semaphore_mem>>
    tpu.enqueue_dma source(%84 : memref<1x32xf32, #tpu.memory_space<any>>) target(%85 : memref<1x32xf32, #tpu.memory_space<vmem>>) target_semaphore(%87 : memref<!tpu.dma_semaphore, #tpu.memory_space<semaphore_mem>>)
    %c12_i32 = arith.constant 12 : i32
    %88 = arith.addi %3, %c12_i32 : i32
    %89 = arith.index_cast %88 : i32 to index
    %90 = memref.load %arg1[%89] : memref<16xi32, #tpu.memory_space<smem>>
    %c12_i32_50 = arith.constant 12 : i32
    %c0_i32_51 = arith.constant 0 : i32
    %91 = tpu.memref_slice %arg2[%90, %c0_i32_51] : memref<64x32xf32, #tpu.memory_space<any>> -> memref<1x32xf32, #tpu.memory_space<any>>
    %c12_i32_52 = arith.constant 12 : i32
    %c0_i32_53 = arith.constant 0 : i32
    %92 = tpu.memref_slice %arg9[%c12_i32_52, %c0_i32_53] : memref<16x32xf32, #tpu.memory_space<vmem>> -> memref<1x32xf32, #tpu.memory_space<vmem>>
    %93 = tpu.memref_slice %arg10[%c12_i32_50] : memref<16x!tpu.dma_semaphore, #tpu.memory_space<semaphore_mem>> -> memref<1x!tpu.dma_semaphore, #tpu.memory_space<semaphore_mem>>
    %94 = tpu.memref_squeeze %93 : memref<1x!tpu.dma_semaphore, #tpu.memory_space<semaphore_mem>> -> memref<!tpu.dma_semaphore, #tpu.memory_space<semaphore_mem>>
    tpu.enqueue_dma source(%91 : memref<1x32xf32, #tpu.memory_space<any>>) target(%92 : memref<1x32xf32, #tpu.memory_space<vmem>>) target_semaphore(%94 : memref<!tpu.dma_semaphore, #tpu.memory_space<semaphore_mem>>)
    %c13_i32 = arith.constant 13 : i32
    %95 = arith.addi %3, %c13_i32 : i32
    %96 = arith.index_cast %95 : i32 to index
    %97 = memref.load %arg1[%96] : memref<16xi32, #tpu.memory_space<smem>>
    %c13_i32_54 = arith.constant 13 : i32
    %c0_i32_55 = arith.constant 0 : i32
    %98 = tpu.memref_slice %arg2[%97, %c0_i32_55] : memref<64x32xf32, #tpu.memory_space<any>> -> memref<1x32xf32, #tpu.memory_space<any>>
    %c13_i32_56 = arith.constant 13 : i32
    %c0_i32_57 = arith.constant 0 : i32
    %99 = tpu.memref_slice %arg9[%c13_i32_56, %c0_i32_57] : memref<16x32xf32, #tpu.memory_space<vmem>> -> memref<1x32xf32, #tpu.memory_space<vmem>>
    %100 = tpu.memref_slice %arg10[%c13_i32_54] : memref<16x!tpu.dma_semaphore, #tpu.memory_space<semaphore_mem>> -> memref<1x!tpu.dma_semaphore, #tpu.memory_space<semaphore_mem>>
    %101 = tpu.memref_squeeze %100 : memref<1x!tpu.dma_semaphore, #tpu.memory_space<semaphore_mem>> -> memref<!tpu.dma_semaphore, #tpu.memory_space<semaphore_mem>>
    tpu.enqueue_dma source(%98 : memref<1x32xf32, #tpu.memory_space<any>>) target(%99 : memref<1x32xf32, #tpu.memory_space<vmem>>) target_semaphore(%101 : memref<!tpu.dma_semaphore, #tpu.memory_space<semaphore_mem>>)
    %c14_i32 = arith.constant 14 : i32
    %102 = arith.addi %3, %c14_i32 : i32
    %103 = arith.index_cast %102 : i32 to index
    %104 = memref.load %arg1[%103] : memref<16xi32, #tpu.memory_space<smem>>
    %c14_i32_58 = arith.constant 14 : i32
    %c0_i32_59 = arith.constant 0 : i32
    %105 = tpu.memref_slice %arg2[%104, %c0_i32_59] : memref<64x32xf32, #tpu.memory_space<any>> -> memref<1x32xf32, #tpu.memory_space<any>>
    %c14_i32_60 = arith.constant 14 : i32
    %c0_i32_61 = arith.constant 0 : i32
    %106 = tpu.memref_slice %arg9[%c14_i32_60, %c0_i32_61] : memref<16x32xf32, #tpu.memory_space<vmem>> -> memref<1x32xf32, #tpu.memory_space<vmem>>
    %107 = tpu.memref_slice %arg10[%c14_i32_58] : memref<16x!tpu.dma_semaphore, #tpu.memory_space<semaphore_mem>> -> memref<1x!tpu.dma_semaphore, #tpu.memory_space<semaphore_mem>>
    %108 = tpu.memref_squeeze %107 : memref<1x!tpu.dma_semaphore, #tpu.memory_space<semaphore_mem>> -> memref<!tpu.dma_semaphore, #tpu.memory_space<semaphore_mem>>
    tpu.enqueue_dma source(%105 : memref<1x32xf32, #tpu.memory_space<any>>) target(%106 : memref<1x32xf32, #tpu.memory_space<vmem>>) target_semaphore(%108 : memref<!tpu.dma_semaphore, #tpu.memory_space<semaphore_mem>>)
    %c15_i32 = arith.constant 15 : i32
    %109 = arith.addi %3, %c15_i32 : i32
    %110 = arith.index_cast %109 : i32 to index
    %111 = memref.load %arg1[%110] : memref<16xi32, #tpu.memory_space<smem>>
    %c15_i32_62 = arith.constant 15 : i32
    %c0_i32_63 = arith.constant 0 : i32
    %112 = tpu.memref_slice %arg2[%111, %c0_i32_63] : memref<64x32xf32, #tpu.memory_space<any>> -> memref<1x32xf32, #tpu.memory_space<any>>
    %c15_i32_64 = arith.constant 15 : i32
    %c0_i32_65 = arith.constant 0 : i32
    %113 = tpu.memref_slice %arg9[%c15_i32_64, %c0_i32_65] : memref<16x32xf32, #tpu.memory_space<vmem>> -> memref<1x32xf32, #tpu.memory_space<vmem>>
    %114 = tpu.memref_slice %arg10[%c15_i32_62] : memref<16x!tpu.dma_semaphore, #tpu.memory_space<semaphore_mem>> -> memref<1x!tpu.dma_semaphore, #tpu.memory_space<semaphore_mem>>
    %115 = tpu.memref_squeeze %114 : memref<1x!tpu.dma_semaphore, #tpu.memory_space<semaphore_mem>> -> memref<!tpu.dma_semaphore, #tpu.memory_space<semaphore_mem>>
    tpu.enqueue_dma source(%112 : memref<1x32xf32, #tpu.memory_space<any>>) target(%113 : memref<1x32xf32, #tpu.memory_space<vmem>>) target_semaphore(%115 : memref<!tpu.dma_semaphore, #tpu.memory_space<semaphore_mem>>)
    %c0_i32_66 = arith.constant 0 : i32
    %c0_i32_67 = arith.constant 0 : i32
    %116 = tpu.memref_slice %arg2[%6, %c0_i32_67] : memref<64x32xf32, #tpu.memory_space<any>> -> memref<1x32xf32, #tpu.memory_space<any>>
    %c0_i32_68 = arith.constant 0 : i32
    %c0_i32_69 = arith.constant 0 : i32
    %117 = tpu.memref_slice %arg9[%c0_i32_68, %c0_i32_69] : memref<16x32xf32, #tpu.memory_space<vmem>> -> memref<1x32xf32, #tpu.memory_space<vmem>>
    %118 = tpu.memref_slice %arg10[%c0_i32_66] : memref<16x!tpu.dma_semaphore, #tpu.memory_space<semaphore_mem>> -> memref<1x!tpu.dma_semaphore, #tpu.memory_space<semaphore_mem>>
    %119 = tpu.memref_squeeze %118 : memref<1x!tpu.dma_semaphore, #tpu.memory_space<semaphore_mem>> -> memref<!tpu.dma_semaphore, #tpu.memory_space<semaphore_mem>>
    tpu.wait_dma2 semaphore(%119 : memref<!tpu.dma_semaphore, #tpu.memory_space<semaphore_mem>>) src(%116 : memref<1x32xf32, #tpu.memory_space<any>>) dst(%117 : memref<1x32xf32, #tpu.memory_space<vmem>>)
    %c1_i32_70 = arith.constant 1 : i32
    %c0_i32_71 = arith.constant 0 : i32
    %120 = tpu.memref_slice %arg2[%13, %c0_i32_71] : memref<64x32xf32, #tpu.memory_space<any>> -> memref<1x32xf32, #tpu.memory_space<any>>
    %c1_i32_72 = arith.constant 1 : i32
    %c0_i32_73 = arith.constant 0 : i32
    %121 = tpu.memref_slice %arg9[%c1_i32_72, %c0_i32_73] : memref<16x32xf32, #tpu.memory_space<vmem>> -> memref<1x32xf32, #tpu.memory_space<vmem>>
    %122 = tpu.memref_slice %arg10[%c1_i32_70] : memref<16x!tpu.dma_semaphore, #tpu.memory_space<semaphore_mem>> -> memref<1x!tpu.dma_semaphore, #tpu.memory_space<semaphore_mem>>
    %123 = tpu.memref_squeeze %122 : memref<1x!tpu.dma_semaphore, #tpu.memory_space<semaphore_mem>> -> memref<!tpu.dma_semaphore, #tpu.memory_space<semaphore_mem>>
    tpu.wait_dma2 semaphore(%123 : memref<!tpu.dma_semaphore, #tpu.memory_space<semaphore_mem>>) src(%120 : memref<1x32xf32, #tpu.memory_space<any>>) dst(%121 : memref<1x32xf32, #tpu.memory_space<vmem>>)
    %c2_i32_74 = arith.constant 2 : i32
    %c0_i32_75 = arith.constant 0 : i32
    %124 = tpu.memref_slice %arg2[%20, %c0_i32_75] : memref<64x32xf32, #tpu.memory_space<any>> -> memref<1x32xf32, #tpu.memory_space<any>>
    %c2_i32_76 = arith.constant 2 : i32
    %c0_i32_77 = arith.constant 0 : i32
    %125 = tpu.memref_slice %arg9[%c2_i32_76, %c0_i32_77] : memref<16x32xf32, #tpu.memory_space<vmem>> -> memref<1x32xf32, #tpu.memory_space<vmem>>
    %126 = tpu.memref_slice %arg10[%c2_i32_74] : memref<16x!tpu.dma_semaphore, #tpu.memory_space<semaphore_mem>> -> memref<1x!tpu.dma_semaphore, #tpu.memory_space<semaphore_mem>>
    %127 = tpu.memref_squeeze %126 : memref<1x!tpu.dma_semaphore, #tpu.memory_space<semaphore_mem>> -> memref<!tpu.dma_semaphore, #tpu.memory_space<semaphore_mem>>
    tpu.wait_dma2 semaphore(%127 : memref<!tpu.dma_semaphore, #tpu.memory_space<semaphore_mem>>) src(%124 : memref<1x32xf32, #tpu.memory_space<any>>) dst(%125 : memref<1x32xf32, #tpu.memory_space<vmem>>)
    %c3_i32_78 = arith.constant 3 : i32
    %c0_i32_79 = arith.constant 0 : i32
    %128 = tpu.memref_slice %arg2[%27, %c0_i32_79] : memref<64x32xf32, #tpu.memory_space<any>> -> memref<1x32xf32, #tpu.memory_space<any>>
    %c3_i32_80 = arith.constant 3 : i32
    %c0_i32_81 = arith.constant 0 : i32
    %129 = tpu.memref_slice %arg9[%c3_i32_80, %c0_i32_81] : memref<16x32xf32, #tpu.memory_space<vmem>> -> memref<1x32xf32, #tpu.memory_space<vmem>>
    %130 = tpu.memref_slice %arg10[%c3_i32_78] : memref<16x!tpu.dma_semaphore, #tpu.memory_space<semaphore_mem>> -> memref<1x!tpu.dma_semaphore, #tpu.memory_space<semaphore_mem>>
    %131 = tpu.memref_squeeze %130 : memref<1x!tpu.dma_semaphore, #tpu.memory_space<semaphore_mem>> -> memref<!tpu.dma_semaphore, #tpu.memory_space<semaphore_mem>>
    tpu.wait_dma2 semaphore(%131 : memref<!tpu.dma_semaphore, #tpu.memory_space<semaphore_mem>>) src(%128 : memref<1x32xf32, #tpu.memory_space<any>>) dst(%129 : memref<1x32xf32, #tpu.memory_space<vmem>>)
    %c4_i32_82 = arith.constant 4 : i32
    %c0_i32_83 = arith.constant 0 : i32
    %132 = tpu.memref_slice %arg2[%34, %c0_i32_83] : memref<64x32xf32, #tpu.memory_space<any>> -> memref<1x32xf32, #tpu.memory_space<any>>
    %c4_i32_84 = arith.constant 4 : i32
    %c0_i32_85 = arith.constant 0 : i32
    %133 = tpu.memref_slice %arg9[%c4_i32_84, %c0_i32_85] : memref<16x32xf32, #tpu.memory_space<vmem>> -> memref<1x32xf32, #tpu.memory_space<vmem>>
    %134 = tpu.memref_slice %arg10[%c4_i32_82] : memref<16x!tpu.dma_semaphore, #tpu.memory_space<semaphore_mem>> -> memref<1x!tpu.dma_semaphore, #tpu.memory_space<semaphore_mem>>
    %135 = tpu.memref_squeeze %134 : memref<1x!tpu.dma_semaphore, #tpu.memory_space<semaphore_mem>> -> memref<!tpu.dma_semaphore, #tpu.memory_space<semaphore_mem>>
    tpu.wait_dma2 semaphore(%135 : memref<!tpu.dma_semaphore, #tpu.memory_space<semaphore_mem>>) src(%132 : memref<1x32xf32, #tpu.memory_space<any>>) dst(%133 : memref<1x32xf32, #tpu.memory_space<vmem>>)
    %c5_i32_86 = arith.constant 5 : i32
    %c0_i32_87 = arith.constant 0 : i32
    %136 = tpu.memref_slice %arg2[%41, %c0_i32_87] : memref<64x32xf32, #tpu.memory_space<any>> -> memref<1x32xf32, #tpu.memory_space<any>>
    %c5_i32_88 = arith.constant 5 : i32
    %c0_i32_89 = arith.constant 0 : i32
    %137 = tpu.memref_slice %arg9[%c5_i32_88, %c0_i32_89] : memref<16x32xf32, #tpu.memory_space<vmem>> -> memref<1x32xf32, #tpu.memory_space<vmem>>
    %138 = tpu.memref_slice %arg10[%c5_i32_86] : memref<16x!tpu.dma_semaphore, #tpu.memory_space<semaphore_mem>> -> memref<1x!tpu.dma_semaphore, #tpu.memory_space<semaphore_mem>>
    %139 = tpu.memref_squeeze %138 : memref<1x!tpu.dma_semaphore, #tpu.memory_space<semaphore_mem>> -> memref<!tpu.dma_semaphore, #tpu.memory_space<semaphore_mem>>
    tpu.wait_dma2 semaphore(%139 : memref<!tpu.dma_semaphore, #tpu.memory_space<semaphore_mem>>) src(%136 : memref<1x32xf32, #tpu.memory_space<any>>) dst(%137 : memref<1x32xf32, #tpu.memory_space<vmem>>)
    %c6_i32_90 = arith.constant 6 : i32
    %c0_i32_91 = arith.constant 0 : i32
    %140 = tpu.memref_slice %arg2[%48, %c0_i32_91] : memref<64x32xf32, #tpu.memory_space<any>> -> memref<1x32xf32, #tpu.memory_space<any>>
    %c6_i32_92 = arith.constant 6 : i32
    %c0_i32_93 = arith.constant 0 : i32
    %141 = tpu.memref_slice %arg9[%c6_i32_92, %c0_i32_93] : memref<16x32xf32, #tpu.memory_space<vmem>> -> memref<1x32xf32, #tpu.memory_space<vmem>>
    %142 = tpu.memref_slice %arg10[%c6_i32_90] : memref<16x!tpu.dma_semaphore, #tpu.memory_space<semaphore_mem>> -> memref<1x!tpu.dma_semaphore, #tpu.memory_space<semaphore_mem>>
    %143 = tpu.memref_squeeze %142 : memref<1x!tpu.dma_semaphore, #tpu.memory_space<semaphore_mem>> -> memref<!tpu.dma_semaphore, #tpu.memory_space<semaphore_mem>>
    tpu.wait_dma2 semaphore(%143 : memref<!tpu.dma_semaphore, #tpu.memory_space<semaphore_mem>>) src(%140 : memref<1x32xf32, #tpu.memory_space<any>>) dst(%141 : memref<1x32xf32, #tpu.memory_space<vmem>>)
    %c7_i32_94 = arith.constant 7 : i32
    %c0_i32_95 = arith.constant 0 : i32
    %144 = tpu.memref_slice %arg2[%55, %c0_i32_95] : memref<64x32xf32, #tpu.memory_space<any>> -> memref<1x32xf32, #tpu.memory_space<any>>
    %c7_i32_96 = arith.constant 7 : i32
    %c0_i32_97 = arith.constant 0 : i32
    %145 = tpu.memref_slice %arg9[%c7_i32_96, %c0_i32_97] : memref<16x32xf32, #tpu.memory_space<vmem>> -> memref<1x32xf32, #tpu.memory_space<vmem>>
    %146 = tpu.memref_slice %arg10[%c7_i32_94] : memref<16x!tpu.dma_semaphore, #tpu.memory_space<semaphore_mem>> -> memref<1x!tpu.dma_semaphore, #tpu.memory_space<semaphore_mem>>
    %147 = tpu.memref_squeeze %146 : memref<1x!tpu.dma_semaphore, #tpu.memory_space<semaphore_mem>> -> memref<!tpu.dma_semaphore, #tpu.memory_space<semaphore_mem>>
    tpu.wait_dma2 semaphore(%147 : memref<!tpu.dma_semaphore, #tpu.memory_space<semaphore_mem>>) src(%144 : memref<1x32xf32, #tpu.memory_space<any>>) dst(%145 : memref<1x32xf32, #tpu.memory_space<vmem>>)
    %c8_i32_98 = arith.constant 8 : i32
    %c0_i32_99 = arith.constant 0 : i32
    %148 = tpu.memref_slice %arg2[%62, %c0_i32_99] : memref<64x32xf32, #tpu.memory_space<any>> -> memref<1x32xf32, #tpu.memory_space<any>>
    %c8_i32_100 = arith.constant 8 : i32
    %c0_i32_101 = arith.constant 0 : i32
    %149 = tpu.memref_slice %arg9[%c8_i32_100, %c0_i32_101] : memref<16x32xf32, #tpu.memory_space<vmem>> -> memref<1x32xf32, #tpu.memory_space<vmem>>
    %150 = tpu.memref_slice %arg10[%c8_i32_98] : memref<16x!tpu.dma_semaphore, #tpu.memory_space<semaphore_mem>> -> memref<1x!tpu.dma_semaphore, #tpu.memory_space<semaphore_mem>>
    %151 = tpu.memref_squeeze %150 : memref<1x!tpu.dma_semaphore, #tpu.memory_space<semaphore_mem>> -> memref<!tpu.dma_semaphore, #tpu.memory_space<semaphore_mem>>
    tpu.wait_dma2 semaphore(%151 : memref<!tpu.dma_semaphore, #tpu.memory_space<semaphore_mem>>) src(%148 : memref<1x32xf32, #tpu.memory_space<any>>) dst(%149 : memref<1x32xf32, #tpu.memory_space<vmem>>)
    %c9_i32_102 = arith.constant 9 : i32
    %c0_i32_103 = arith.constant 0 : i32
    %152 = tpu.memref_slice %arg2[%69, %c0_i32_103] : memref<64x32xf32, #tpu.memory_space<any>> -> memref<1x32xf32, #tpu.memory_space<any>>
    %c9_i32_104 = arith.constant 9 : i32
    %c0_i32_105 = arith.constant 0 : i32
    %153 = tpu.memref_slice %arg9[%c9_i32_104, %c0_i32_105] : memref<16x32xf32, #tpu.memory_space<vmem>> -> memref<1x32xf32, #tpu.memory_space<vmem>>
    %154 = tpu.memref_slice %arg10[%c9_i32_102] : memref<16x!tpu.dma_semaphore, #tpu.memory_space<semaphore_mem>> -> memref<1x!tpu.dma_semaphore, #tpu.memory_space<semaphore_mem>>
    %155 = tpu.memref_squeeze %154 : memref<1x!tpu.dma_semaphore, #tpu.memory_space<semaphore_mem>> -> memref<!tpu.dma_semaphore, #tpu.memory_space<semaphore_mem>>
    tpu.wait_dma2 semaphore(%155 : memref<!tpu.dma_semaphore, #tpu.memory_space<semaphore_mem>>) src(%152 : memref<1x32xf32, #tpu.memory_space<any>>) dst(%153 : memref<1x32xf32, #tpu.memory_space<vmem>>)
    %c10_i32_106 = arith.constant 10 : i32
    %c0_i32_107 = arith.constant 0 : i32
    %156 = tpu.memref_slice %arg2[%76, %c0_i32_107] : memref<64x32xf32, #tpu.memory_space<any>> -> memref<1x32xf32, #tpu.memory_space<any>>
    %c10_i32_108 = arith.constant 10 : i32
    %c0_i32_109 = arith.constant 0 : i32
    %157 = tpu.memref_slice %arg9[%c10_i32_108, %c0_i32_109] : memref<16x32xf32, #tpu.memory_space<vmem>> -> memref<1x32xf32, #tpu.memory_space<vmem>>
    %158 = tpu.memref_slice %arg10[%c10_i32_106] : memref<16x!tpu.dma_semaphore, #tpu.memory_space<semaphore_mem>> -> memref<1x!tpu.dma_semaphore, #tpu.memory_space<semaphore_mem>>
    %159 = tpu.memref_squeeze %158 : memref<1x!tpu.dma_semaphore, #tpu.memory_space<semaphore_mem>> -> memref<!tpu.dma_semaphore, #tpu.memory_space<semaphore_mem>>
    tpu.wait_dma2 semaphore(%159 : memref<!tpu.dma_semaphore, #tpu.memory_space<semaphore_mem>>) src(%156 : memref<1x32xf32, #tpu.memory_space<any>>) dst(%157 : memref<1x32xf32, #tpu.memory_space<vmem>>)
    %c11_i32_110 = arith.constant 11 : i32
    %c0_i32_111 = arith.constant 0 : i32
    %160 = tpu.memref_slice %arg2[%83, %c0_i32_111] : memref<64x32xf32, #tpu.memory_space<any>> -> memref<1x32xf32, #tpu.memory_space<any>>
    %c11_i32_112 = arith.constant 11 : i32
    %c0_i32_113 = arith.constant 0 : i32
    %161 = tpu.memref_slice %arg9[%c11_i32_112, %c0_i32_113] : memref<16x32xf32, #tpu.memory_space<vmem>> -> memref<1x32xf32, #tpu.memory_space<vmem>>
    %162 = tpu.memref_slice %arg10[%c11_i32_110] : memref<16x!tpu.dma_semaphore, #tpu.memory_space<semaphore_mem>> -> memref<1x!tpu.dma_semaphore, #tpu.memory_space<semaphore_mem>>
    %163 = tpu.memref_squeeze %162 : memref<1x!tpu.dma_semaphore, #tpu.memory_space<semaphore_mem>> -> memref<!tpu.dma_semaphore, #tpu.memory_space<semaphore_mem>>
    tpu.wait_dma2 semaphore(%163 : memref<!tpu.dma_semaphore, #tpu.memory_space<semaphore_mem>>) src(%160 : memref<1x32xf32, #tpu.memory_space<any>>) dst(%161 : memref<1x32xf32, #tpu.memory_space<vmem>>)
    %c12_i32_114 = arith.constant 12 : i32
    %c0_i32_115 = arith.constant 0 : i32
    %164 = tpu.memref_slice %arg2[%90, %c0_i32_115] : memref<64x32xf32, #tpu.memory_space<any>> -> memref<1x32xf32, #tpu.memory_space<any>>
    %c12_i32_116 = arith.constant 12 : i32
    %c0_i32_117 = arith.constant 0 : i32
    %165 = tpu.memref_slice %arg9[%c12_i32_116, %c0_i32_117] : memref<16x32xf32, #tpu.memory_space<vmem>> -> memref<1x32xf32, #tpu.memory_space<vmem>>
    %166 = tpu.memref_slice %arg10[%c12_i32_114] : memref<16x!tpu.dma_semaphore, #tpu.memory_space<semaphore_mem>> -> memref<1x!tpu.dma_semaphore, #tpu.memory_space<semaphore_mem>>
    %167 = tpu.memref_squeeze %166 : memref<1x!tpu.dma_semaphore, #tpu.memory_space<semaphore_mem>> -> memref<!tpu.dma_semaphore, #tpu.memory_space<semaphore_mem>>
    tpu.wait_dma2 semaphore(%167 : memref<!tpu.dma_semaphore, #tpu.memory_space<semaphore_mem>>) src(%164 : memref<1x32xf32, #tpu.memory_space<any>>) dst(%165 : memref<1x32xf32, #tpu.memory_space<vmem>>)
    %c13_i32_118 = arith.constant 13 : i32
    %c0_i32_119 = arith.constant 0 : i32
    %168 = tpu.memref_slice %arg2[%97, %c0_i32_119] : memref<64x32xf32, #tpu.memory_space<any>> -> memref<1x32xf32, #tpu.memory_space<any>>
    %c13_i32_120 = arith.constant 13 : i32
    %c0_i32_121 = arith.constant 0 : i32
    %169 = tpu.memref_slice %arg9[%c13_i32_120, %c0_i32_121] : memref<16x32xf32, #tpu.memory_space<vmem>> -> memref<1x32xf32, #tpu.memory_space<vmem>>
    %170 = tpu.memref_slice %arg10[%c13_i32_118] : memref<16x!tpu.dma_semaphore, #tpu.memory_space<semaphore_mem>> -> memref<1x!tpu.dma_semaphore, #tpu.memory_space<semaphore_mem>>
    %171 = tpu.memref_squeeze %170 : memref<1x!tpu.dma_semaphore, #tpu.memory_space<semaphore_mem>> -> memref<!tpu.dma_semaphore, #tpu.memory_space<semaphore_mem>>
    tpu.wait_dma2 semaphore(%171 : memref<!tpu.dma_semaphore, #tpu.memory_space<semaphore_mem>>) src(%168 : memref<1x32xf32, #tpu.memory_space<any>>) dst(%169 : memref<1x32xf32, #tpu.memory_space<vmem>>)
    %c14_i32_122 = arith.constant 14 : i32
    %c0_i32_123 = arith.constant 0 : i32
    %172 = tpu.memref_slice %arg2[%104, %c0_i32_123] : memref<64x32xf32, #tpu.memory_space<any>> -> memref<1x32xf32, #tpu.memory_space<any>>
    %c14_i32_124 = arith.constant 14 : i32
    %c0_i32_125 = arith.constant 0 : i32
    %173 = tpu.memref_slice %arg9[%c14_i32_124, %c0_i32_125] : memref<16x32xf32, #tpu.memory_space<vmem>> -> memref<1x32xf32, #tpu.memory_space<vmem>>
    %174 = tpu.memref_slice %arg10[%c14_i32_122] : memref<16x!tpu.dma_semaphore, #tpu.memory_space<semaphore_mem>> -> memref<1x!tpu.dma_semaphore, #tpu.memory_space<semaphore_mem>>
    %175 = tpu.memref_squeeze %174 : memref<1x!tpu.dma_semaphore, #tpu.memory_space<semaphore_mem>> -> memref<!tpu.dma_semaphore, #tpu.memory_space<semaphore_mem>>
    tpu.wait_dma2 semaphore(%175 : memref<!tpu.dma_semaphore, #tpu.memory_space<semaphore_mem>>) src(%172 : memref<1x32xf32, #tpu.memory_space<any>>) dst(%173 : memref<1x32xf32, #tpu.memory_space<vmem>>)
    %c15_i32_126 = arith.constant 15 : i32
    %c0_i32_127 = arith.constant 0 : i32
    %176 = tpu.memref_slice %arg2[%111, %c0_i32_127] : memref<64x32xf32, #tpu.memory_space<any>> -> memref<1x32xf32, #tpu.memory_space<any>>
    %c15_i32_128 = arith.constant 15 : i32
    %c0_i32_129 = arith.constant 0 : i32
    %177 = tpu.memref_slice %arg9[%c15_i32_128, %c0_i32_129] : memref<16x32xf32, #tpu.memory_space<vmem>> -> memref<1x32xf32, #tpu.memory_space<vmem>>
    %178 = tpu.memref_slice %arg10[%c15_i32_126] : memref<16x!tpu.dma_semaphore, #tpu.memory_space<semaphore_mem>> -> memref<1x!tpu.dma_semaphore, #tpu.memory_space<semaphore_mem>>
    %179 = tpu.memref_squeeze %178 : memref<1x!tpu.dma_semaphore, #tpu.memory_space<semaphore_mem>> -> memref<!tpu.dma_semaphore, #tpu.memory_space<semaphore_mem>>
    tpu.wait_dma2 semaphore(%179 : memref<!tpu.dma_semaphore, #tpu.memory_space<semaphore_mem>>) src(%176 : memref<1x32xf32, #tpu.memory_space<any>>) dst(%177 : memref<1x32xf32, #tpu.memory_space<vmem>>)
    %c0 = arith.constant 0 : index
    %c0_130 = arith.constant 0 : index
    %180 = vector.load %arg3[%c0, %c0_130] : memref<32x128xbf16, #tpu.memory_space<vmem>>, vector<32x128xbf16>
    %c0_131 = arith.constant 0 : index
    %c0_132 = arith.constant 0 : index
    %181 = vector.load %arg4[%c0_131, %c0_132] : memref<32x128xbf16, #tpu.memory_space<vmem>>, vector<32x128xbf16>
    %c0_133 = arith.constant 0 : index
    %c0_134 = arith.constant 0 : index
    %182 = vector.load %arg5[%c0_133, %c0_134] : memref<1x128xf32, #tpu.memory_space<vmem>>, vector<1x128xf32>
    %c0_135 = arith.constant 0 : index
    %c0_136 = arith.constant 0 : index
    %183 = vector.load %arg9[%c0_135, %c0_136] : memref<16x32xf32, #tpu.memory_space<vmem>>, vector<16x32xf32>
    %184 = arith.truncf %183 : vector<16x32xf32> to vector<16x32xbf16>
    %cst = arith.constant dense<0.000000e+00> : vector<16x128xf32>
    %185 = tpu.matmul %184, %180, %cst {dimension_numbers = #tpu.dot_dimension_numbers<[1], [0], [0], [1], [0, 0, 1, 1], [], []>} : vector<16x32xbf16>, vector<32x128xbf16>, vector<16x128xf32> -> vector<16x128xf32>
    %186 = vector.broadcast %182 : vector<1x128xf32> to vector<16x128xf32>
    %187 = arith.addf %185, %186 : vector<16x128xf32>
    %188 = tpu.iota {dimensions = array<i32: 1>} : vector<2x128xi32>
    %c64_i32 = arith.constant 64 : i32
    %189 = vector.broadcast %c64_i32 : i32 to vector<2x128xi32>
    %190 = arith.cmpi sge, %188, %189 : vector<2x128xi32>
    %c96_i32 = arith.constant 96 : i32
    %191 = vector.broadcast %c96_i32 : i32 to vector<2x128xi32>
    %192 = arith.cmpi slt, %188, %191 : vector<2x128xi32>
    %193 = arith.andi %190, %192 : vector<2x128xi1>
    %c0_137 = arith.constant 0 : index
    %c0_138 = arith.constant 0 : index
    %194 = vector.load %arg12[%c0_137, %c0_138] : memref<2x32xf32, #tpu.memory_space<vmem>>, vector<2x32xf32>
    %c0_139 = arith.constant 0 : index
    %c0_140 = arith.constant 0 : index
    %195 = vector.load %arg13[%c0_139, %c0_140] : memref<2x32xf32, #tpu.memory_space<vmem>>, vector<2x32xf32>
    %196 = vector.extract_strided_slice %187 {offsets = [0, 0], sizes = [2, 128], strides = [1, 1]} : vector<16x128xf32> to vector<2x128xf32>
    %197 = arith.truncf %194 : vector<2x32xf32> to vector<2x32xbf16>
    %cst_141 = arith.constant dense<0.000000e+00> : vector<2x128xf32>
    %198 = tpu.matmul %197, %181, %cst_141 {dimension_numbers = #tpu.dot_dimension_numbers<[1], [0], [0], [1], [0, 0, 1, 1], [], []>} : vector<2x32xbf16>, vector<32x128xbf16>, vector<2x128xf32> -> vector<2x128xf32>
    %199 = arith.addf %196, %198 : vector<2x128xf32>
    %200 = math.tanh %199 : vector<2x128xf32>
    %201 = arith.negf %199 : vector<2x128xf32>
    %202 = math.exp %201 : vector<2x128xf32>
    %cst_142 = arith.constant 1.000000e+00 : f32
    %203 = vector.broadcast %cst_142 : f32 to vector<2x128xf32>
    %204 = arith.addf %203, %202 : vector<2x128xf32>
    %205 = arith.divf %203, %204 : vector<2x128xf32>
    %206 = arith.select %193, %200, %205 : vector<2x128xi1>, vector<2x128xf32>
    %207 = vector.extract_strided_slice %206 {offsets = [0, 0], sizes = [2, 32], strides = [1, 1]} : vector<2x128xf32> to vector<2x32xf32>
    %208 = vector.extract_strided_slice %206 {offsets = [0, 32], sizes = [2, 32], strides = [1, 1]} : vector<2x128xf32> to vector<2x32xf32>
    %209 = vector.extract_strided_slice %206 {offsets = [0, 64], sizes = [2, 32], strides = [1, 1]} : vector<2x128xf32> to vector<2x32xf32>
    %210 = vector.extract_strided_slice %206 {offsets = [0, 96], sizes = [2, 32], strides = [1, 1]} : vector<2x128xf32> to vector<2x32xf32>
    %211 = arith.mulf %208, %195 : vector<2x32xf32>
    %212 = arith.mulf %207, %209 : vector<2x32xf32>
    %213 = arith.addf %211, %212 : vector<2x32xf32>
    %214 = math.tanh %213 : vector<2x32xf32>
    %215 = arith.mulf %210, %214 : vector<2x32xf32>
    %c0_143 = arith.constant 0 : index
    %c0_144 = arith.constant 0 : index
    %216 = vector.load %arg11[%c0_143, %c0_144] : memref<16x32xf32, #tpu.memory_space<vmem>>, vector<2x32xf32>
    tpu.vector_store %arg11[%c0_143, %c0_144], %215 {strides = array<i32>} : memref<16x32xf32, #tpu.memory_space<vmem>>, vector<2x32xf32>,
    %217 = vector.extract_strided_slice %187 {offsets = [2, 0], sizes = [2, 128], strides = [1, 1]} : vector<16x128xf32> to vector<2x128xf32>
    %218 = arith.truncf %215 : vector<2x32xf32> to vector<2x32xbf16>
    %cst_145 = arith.constant dense<0.000000e+00> : vector<2x128xf32>
    %219 = tpu.matmul %218, %181, %cst_145 {dimension_numbers = #tpu.dot_dimension_numbers<[1], [0], [0], [1], [0, 0, 1, 1], [], []>} : vector<2x32xbf16>, vector<32x128xbf16>, vector<2x128xf32> -> vector<2x128xf32>
    %220 = arith.addf %217, %219 : vector<2x128xf32>
    %221 = math.tanh %220 : vector<2x128xf32>
    %222 = arith.negf %220 : vector<2x128xf32>
    %223 = math.exp %222 : vector<2x128xf32>
    %cst_146 = arith.constant 1.000000e+00 : f32
    %224 = vector.broadcast %cst_146 : f32 to vector<2x128xf32>
    %225 = arith.addf %224, %223 : vector<2x128xf32>
    %226 = arith.divf %224, %225 : vector<2x128xf32>
    %227 = arith.select %193, %221, %226 : vector<2x128xi1>, vector<2x128xf32>
    %228 = vector.extract_strided_slice %227 {offsets = [0, 0], sizes = [2, 32], strides = [1, 1]} : vector<2x128xf32> to vector<2x32xf32>
    %229 = vector.extract_strided_slice %227 {offsets = [0, 32], sizes = [2, 32], strides = [1, 1]} : vector<2x128xf32> to vector<2x32xf32>
    %230 = vector.extract_strided_slice %227 {offsets = [0, 64], sizes = [2, 32], strides = [1, 1]} : vector<2x128xf32> to vector<2x32xf32>
    %231 = vector.extract_strided_slice %227 {offsets = [0, 96], sizes = [2, 32], strides = [1, 1]} : vector<2x128xf32> to vector<2x32xf32>
    %232 = arith.mulf %229, %213 : vector<2x32xf32>
    %233 = arith.mulf %228, %230 : vector<2x32xf32>
    %234 = arith.addf %232, %233 : vector<2x32xf32>
    %235 = math.tanh %234 : vector<2x32xf32>
    %236 = arith.mulf %231, %235 : vector<2x32xf32>
    %c2 = arith.constant 2 : index
    %c0_147 = arith.constant 0 : index
    %237 = vector.load %arg11[%c2, %c0_147] : memref<16x32xf32, #tpu.memory_space<vmem>>, vector<2x32xf32>
    tpu.vector_store %arg11[%c2, %c0_147], %236 {strides = array<i32>} : memref<16x32xf32, #tpu.memory_space<vmem>>, vector<2x32xf32>,
    %238 = vector.extract_strided_slice %187 {offsets = [4, 0], sizes = [2, 128], strides = [1, 1]} : vector<16x128xf32> to vector<2x128xf32>
    %239 = arith.truncf %236 : vector<2x32xf32> to vector<2x32xbf16>
    %cst_148 = arith.constant dense<0.000000e+00> : vector<2x128xf32>
    %240 = tpu.matmul %239, %181, %cst_148 {dimension_numbers = #tpu.dot_dimension_numbers<[1], [0], [0], [1], [0, 0, 1, 1], [], []>} : vector<2x32xbf16>, vector<32x128xbf16>, vector<2x128xf32> -> vector<2x128xf32>
    %241 = arith.addf %238, %240 : vector<2x128xf32>
    %242 = math.tanh %241 : vector<2x128xf32>
    %243 = arith.negf %241 : vector<2x128xf32>
    %244 = math.exp %243 : vector<2x128xf32>
    %cst_149 = arith.constant 1.000000e+00 : f32
    %245 = vector.broadcast %cst_149 : f32 to vector<2x128xf32>
    %246 = arith.addf %245, %244 : vector<2x128xf32>
    %247 = arith.divf %245, %246 : vector<2x128xf32>
    %248 = arith.select %193, %242, %247 : vector<2x128xi1>, vector<2x128xf32>
    %249 = vector.extract_strided_slice %248 {offsets = [0, 0], sizes = [2, 32], strides = [1, 1]} : vector<2x128xf32> to vector<2x32xf32>
    %250 = vector.extract_strided_slice %248 {offsets = [0, 32], sizes = [2, 32], strides = [1, 1]} : vector<2x128xf32> to vector<2x32xf32>
    %251 = vector.extract_strided_slice %248 {offsets = [0, 64], sizes = [2, 32], strides = [1, 1]} : vector<2x128xf32> to vector<2x32xf32>
    %252 = vector.extract_strided_slice %248 {offsets = [0, 96], sizes = [2, 32], strides = [1, 1]} : vector<2x128xf32> to vector<2x32xf32>
    %253 = arith.mulf %250, %234 : vector<2x32xf32>
    %254 = arith.mulf %249, %251 : vector<2x32xf32>
    %255 = arith.addf %253, %254 : vector<2x32xf32>
    %256 = math.tanh %255 : vector<2x32xf32>
    %257 = arith.mulf %252, %256 : vector<2x32xf32>
    %c4 = arith.constant 4 : index
    %c0_150 = arith.constant 0 : index
    %258 = vector.load %arg11[%c4, %c0_150] : memref<16x32xf32, #tpu.memory_space<vmem>>, vector<2x32xf32>
    tpu.vector_store %arg11[%c4, %c0_150], %257 {strides = array<i32>} : memref<16x32xf32, #tpu.memory_space<vmem>>, vector<2x32xf32>,
    %259 = vector.extract_strided_slice %187 {offsets = [6, 0], sizes = [2, 128], strides = [1, 1]} : vector<16x128xf32> to vector<2x128xf32>
    %260 = arith.truncf %257 : vector<2x32xf32> to vector<2x32xbf16>
    %cst_151 = arith.constant dense<0.000000e+00> : vector<2x128xf32>
    %261 = tpu.matmul %260, %181, %cst_151 {dimension_numbers = #tpu.dot_dimension_numbers<[1], [0], [0], [1], [0, 0, 1, 1], [], []>} : vector<2x32xbf16>, vector<32x128xbf16>, vector<2x128xf32> -> vector<2x128xf32>
    %262 = arith.addf %259, %261 : vector<2x128xf32>
    %263 = math.tanh %262 : vector<2x128xf32>
    %264 = arith.negf %262 : vector<2x128xf32>
    %265 = math.exp %264 : vector<2x128xf32>
    %cst_152 = arith.constant 1.000000e+00 : f32
    %266 = vector.broadcast %cst_152 : f32 to vector<2x128xf32>
    %267 = arith.addf %266, %265 : vector<2x128xf32>
    %268 = arith.divf %266, %267 : vector<2x128xf32>
    %269 = arith.select %193, %263, %268 : vector<2x128xi1>, vector<2x128xf32>
    %270 = vector.extract_strided_slice %269 {offsets = [0, 0], sizes = [2, 32], strides = [1, 1]} : vector<2x128xf32> to vector<2x32xf32>
    %271 = vector.extract_strided_slice %269 {offsets = [0, 32], sizes = [2, 32], strides = [1, 1]} : vector<2x128xf32> to vector<2x32xf32>
    %272 = vector.extract_strided_slice %269 {offsets = [0, 64], sizes = [2, 32], strides = [1, 1]} : vector<2x128xf32> to vector<2x32xf32>
    %273 = vector.extract_strided_slice %269 {offsets = [0, 96], sizes = [2, 32], strides = [1, 1]} : vector<2x128xf32> to vector<2x32xf32>
    %274 = arith.mulf %271, %255 : vector<2x32xf32>
    %275 = arith.mulf %270, %272 : vector<2x32xf32>
    %276 = arith.addf %274, %275 : vector<2x32xf32>
    %277 = math.tanh %276 : vector<2x32xf32>
    %278 = arith.mulf %273, %277 : vector<2x32xf32>
    %c6 = arith.constant 6 : index
    %c0_153 = arith.constant 0 : index
    %279 = vector.load %arg11[%c6, %c0_153] : memref<16x32xf32, #tpu.memory_space<vmem>>, vector<2x32xf32>
    tpu.vector_store %arg11[%c6, %c0_153], %278 {strides = array<i32>} : memref<16x32xf32, #tpu.memory_space<vmem>>, vector<2x32xf32>,
    %280 = vector.extract_strided_slice %187 {offsets = [8, 0], sizes = [2, 128], strides = [1, 1]} : vector<16x128xf32> to vector<2x128xf32>
    %281 = arith.truncf %278 : vector<2x32xf32> to vector<2x32xbf16>
    %cst_154 = arith.constant dense<0.000000e+00> : vector<2x128xf32>
    %282 = tpu.matmul %281, %181, %cst_154 {dimension_numbers = #tpu.dot_dimension_numbers<[1], [0], [0], [1], [0, 0, 1, 1], [], []>} : vector<2x32xbf16>, vector<32x128xbf16>, vector<2x128xf32> -> vector<2x128xf32>
    %283 = arith.addf %280, %282 : vector<2x128xf32>
    %284 = math.tanh %283 : vector<2x128xf32>
    %285 = arith.negf %283 : vector<2x128xf32>
    %286 = math.exp %285 : vector<2x128xf32>
    %cst_155 = arith.constant 1.000000e+00 : f32
    %287 = vector.broadcast %cst_155 : f32 to vector<2x128xf32>
    %288 = arith.addf %287, %286 : vector<2x128xf32>
    %289 = arith.divf %287, %288 : vector<2x128xf32>
    %290 = arith.select %193, %284, %289 : vector<2x128xi1>, vector<2x128xf32>
    %291 = vector.extract_strided_slice %290 {offsets = [0, 0], sizes = [2, 32], strides = [1, 1]} : vector<2x128xf32> to vector<2x32xf32>
    %292 = vector.extract_strided_slice %290 {offsets = [0, 32], sizes = [2, 32], strides = [1, 1]} : vector<2x128xf32> to vector<2x32xf32>
    %293 = vector.extract_strided_slice %290 {offsets = [0, 64], sizes = [2, 32], strides = [1, 1]} : vector<2x128xf32> to vector<2x32xf32>
    %294 = vector.extract_strided_slice %290 {offsets = [0, 96], sizes = [2, 32], strides = [1, 1]} : vector<2x128xf32> to vector<2x32xf32>
    %295 = arith.mulf %292, %276 : vector<2x32xf32>
    %296 = arith.mulf %291, %293 : vector<2x32xf32>
    %297 = arith.addf %295, %296 : vector<2x32xf32>
    %298 = math.tanh %297 : vector<2x32xf32>
    %299 = arith.mulf %294, %298 : vector<2x32xf32>
    %c8 = arith.constant 8 : index
    %c0_156 = arith.constant 0 : index
    %300 = vector.load %arg11[%c8, %c0_156] : memref<16x32xf32, #tpu.memory_space<vmem>>, vector<2x32xf32>
    tpu.vector_store %arg11[%c8, %c0_156], %299 {strides = array<i32>} : memref<16x32xf32, #tpu.memory_space<vmem>>, vector<2x32xf32>,
    %301 = vector.extract_strided_slice %187 {offsets = [10, 0], sizes = [2, 128], strides = [1, 1]} : vector<16x128xf32> to vector<2x128xf32>
    %302 = arith.truncf %299 : vector<2x32xf32> to vector<2x32xbf16>
    %cst_157 = arith.constant dense<0.000000e+00> : vector<2x128xf32>
    %303 = tpu.matmul %302, %181, %cst_157 {dimension_numbers = #tpu.dot_dimension_numbers<[1], [0], [0], [1], [0, 0, 1, 1], [], []>} : vector<2x32xbf16>, vector<32x128xbf16>, vector<2x128xf32> -> vector<2x128xf32>
    %304 = arith.addf %301, %303 : vector<2x128xf32>
    %305 = math.tanh %304 : vector<2x128xf32>
    %306 = arith.negf %304 : vector<2x128xf32>
    %307 = math.exp %306 : vector<2x128xf32>
    %cst_158 = arith.constant 1.000000e+00 : f32
    %308 = vector.broadcast %cst_158 : f32 to vector<2x128xf32>
    %309 = arith.addf %308, %307 : vector<2x128xf32>
    %310 = arith.divf %308, %309 : vector<2x128xf32>
    %311 = arith.select %193, %305, %310 : vector<2x128xi1>, vector<2x128xf32>
    %312 = vector.extract_strided_slice %311 {offsets = [0, 0], sizes = [2, 32], strides = [1, 1]} : vector<2x128xf32> to vector<2x32xf32>
    %313 = vector.extract_strided_slice %311 {offsets = [0, 32], sizes = [2, 32], strides = [1, 1]} : vector<2x128xf32> to vector<2x32xf32>
    %314 = vector.extract_strided_slice %311 {offsets = [0, 64], sizes = [2, 32], strides = [1, 1]} : vector<2x128xf32> to vector<2x32xf32>
    %315 = vector.extract_strided_slice %311 {offsets = [0, 96], sizes = [2, 32], strides = [1, 1]} : vector<2x128xf32> to vector<2x32xf32>
    %316 = arith.mulf %313, %297 : vector<2x32xf32>
    %317 = arith.mulf %312, %314 : vector<2x32xf32>
    %318 = arith.addf %316, %317 : vector<2x32xf32>
    %319 = math.tanh %318 : vector<2x32xf32>
    %320 = arith.mulf %315, %319 : vector<2x32xf32>
    %c10 = arith.constant 10 : index
    %c0_159 = arith.constant 0 : index
    %321 = vector.load %arg11[%c10, %c0_159] : memref<16x32xf32, #tpu.memory_space<vmem>>, vector<2x32xf32>
    tpu.vector_store %arg11[%c10, %c0_159], %320 {strides = array<i32>} : memref<16x32xf32, #tpu.memory_space<vmem>>, vector<2x32xf32>,
    %322 = vector.extract_strided_slice %187 {offsets = [12, 0], sizes = [2, 128], strides = [1, 1]} : vector<16x128xf32> to vector<2x128xf32>
    %323 = arith.truncf %320 : vector<2x32xf32> to vector<2x32xbf16>
    %cst_160 = arith.constant dense<0.000000e+00> : vector<2x128xf32>
    %324 = tpu.matmul %323, %181, %cst_160 {dimension_numbers = #tpu.dot_dimension_numbers<[1], [0], [0], [1], [0, 0, 1, 1], [], []>} : vector<2x32xbf16>, vector<32x128xbf16>, vector<2x128xf32> -> vector<2x128xf32>
    %325 = arith.addf %322, %324 : vector<2x128xf32>
    %326 = math.tanh %325 : vector<2x128xf32>
    %327 = arith.negf %325 : vector<2x128xf32>
    %328 = math.exp %327 : vector<2x128xf32>
    %cst_161 = arith.constant 1.000000e+00 : f32
    %329 = vector.broadcast %cst_161 : f32 to vector<2x128xf32>
    %330 = arith.addf %329, %328 : vector<2x128xf32>
    %331 = arith.divf %329, %330 : vector<2x128xf32>
    %332 = arith.select %193, %326, %331 : vector<2x128xi1>, vector<2x128xf32>
    %333 = vector.extract_strided_slice %332 {offsets = [0, 0], sizes = [2, 32], strides = [1, 1]} : vector<2x128xf32> to vector<2x32xf32>
    %334 = vector.extract_strided_slice %332 {offsets = [0, 32], sizes = [2, 32], strides = [1, 1]} : vector<2x128xf32> to vector<2x32xf32>
    %335 = vector.extract_strided_slice %332 {offsets = [0, 64], sizes = [2, 32], strides = [1, 1]} : vector<2x128xf32> to vector<2x32xf32>
    %336 = vector.extract_strided_slice %332 {offsets = [0, 96], sizes = [2, 32], strides = [1, 1]} : vector<2x128xf32> to vector<2x32xf32>
    %337 = arith.mulf %334, %318 : vector<2x32xf32>
    %338 = arith.mulf %333, %335 : vector<2x32xf32>
    %339 = arith.addf %337, %338 : vector<2x32xf32>
    %340 = math.tanh %339 : vector<2x32xf32>
    %341 = arith.mulf %336, %340 : vector<2x32xf32>
    %c12 = arith.constant 12 : index
    %c0_162 = arith.constant 0 : index
    %342 = vector.load %arg11[%c12, %c0_162] : memref<16x32xf32, #tpu.memory_space<vmem>>, vector<2x32xf32>
    tpu.vector_store %arg11[%c12, %c0_162], %341 {strides = array<i32>} : memref<16x32xf32, #tpu.memory_space<vmem>>, vector<2x32xf32>,
    %343 = vector.extract_strided_slice %187 {offsets = [14, 0], sizes = [2, 128], strides = [1, 1]} : vector<16x128xf32> to vector<2x128xf32>
    %344 = arith.truncf %341 : vector<2x32xf32> to vector<2x32xbf16>
    %cst_163 = arith.constant dense<0.000000e+00> : vector<2x128xf32>
    %345 = tpu.matmul %344, %181, %cst_163 {dimension_numbers = #tpu.dot_dimension_numbers<[1], [0], [0], [1], [0, 0, 1, 1], [], []>} : vector<2x32xbf16>, vector<32x128xbf16>, vector<2x128xf32> -> vector<2x128xf32>
    %346 = arith.addf %343, %345 : vector<2x128xf32>
    %347 = math.tanh %346 : vector<2x128xf32>
    %348 = arith.negf %346 : vector<2x128xf32>
    %349 = math.exp %348 : vector<2x128xf32>
    %cst_164 = arith.constant 1.000000e+00 : f32
    %350 = vector.broadcast %cst_164 : f32 to vector<2x128xf32>
    %351 = arith.addf %350, %349 : vector<2x128xf32>
    %352 = arith.divf %350, %351 : vector<2x128xf32>
    %353 = arith.select %193, %347, %352 : vector<2x128xi1>, vector<2x128xf32>
    %354 = vector.extract_strided_slice %353 {offsets = [0, 0], sizes = [2, 32], strides = [1, 1]} : vector<2x128xf32> to vector<2x32xf32>
    %355 = vector.extract_strided_slice %353 {offsets = [0, 32], sizes = [2, 32], strides = [1, 1]} : vector<2x128xf32> to vector<2x32xf32>
    %356 = vector.extract_strided_slice %353 {offsets = [0, 64], sizes = [2, 32], strides = [1, 1]} : vector<2x128xf32> to vector<2x32xf32>
    %357 = vector.extract_strided_slice %353 {offsets = [0, 96], sizes = [2, 32], strides = [1, 1]} : vector<2x128xf32> to vector<2x32xf32>
    %358 = arith.mulf %355, %339 : vector<2x32xf32>
    %359 = arith.mulf %354, %356 : vector<2x32xf32>
    %360 = arith.addf %358, %359 : vector<2x32xf32>
    %361 = math.tanh %360 : vector<2x32xf32>
    %362 = arith.mulf %357, %361 : vector<2x32xf32>
    %c14 = arith.constant 14 : index
    %c0_165 = arith.constant 0 : index
    %363 = vector.load %arg11[%c14, %c0_165] : memref<16x32xf32, #tpu.memory_space<vmem>>, vector<2x32xf32>
    tpu.vector_store %arg11[%c14, %c0_165], %362 {strides = array<i32>} : memref<16x32xf32, #tpu.memory_space<vmem>>, vector<2x32xf32>,
    %c0_166 = arith.constant 0 : index
    %c0_167 = arith.constant 0 : index
    %364 = vector.load %arg12[%c0_166, %c0_167] : memref<2x32xf32, #tpu.memory_space<vmem>>, vector<2x32xf32>
    tpu.vector_store %arg12[%c0_166, %c0_167], %362 {strides = array<i32>} : memref<2x32xf32, #tpu.memory_space<vmem>>, vector<2x32xf32>,
    %c0_168 = arith.constant 0 : index
    %c0_169 = arith.constant 0 : index
    %365 = vector.load %arg13[%c0_168, %c0_169] : memref<2x32xf32, #tpu.memory_space<vmem>>, vector<2x32xf32>
    tpu.vector_store %arg13[%c0_168, %c0_169], %360 {strides = array<i32>} : memref<2x32xf32, #tpu.memory_space<vmem>>, vector<2x32xf32>,
    %c0_170 = arith.constant 0 : index
    %c0_171 = arith.constant 0 : index
    %366 = vector.load %arg11[%c0_170, %c0_171] : memref<16x32xf32, #tpu.memory_space<vmem>>, vector<16x32xf32>
    %367 = arith.truncf %366 : vector<16x32xf32> to vector<16x32xbf16>
    %c0_172 = arith.constant 0 : index
    %c0_173 = arith.constant 0 : index
    %368 = vector.load %arg6[%c0_172, %c0_173] : memref<32x128xbf16, #tpu.memory_space<vmem>>, vector<32x128xbf16>
    %cst_174 = arith.constant dense<0.000000e+00> : vector<16x128xf32>
    %369 = tpu.matmul %367, %368, %cst_174 {dimension_numbers = #tpu.dot_dimension_numbers<[1], [0], [0], [1], [0, 0, 1, 1], [], []>} : vector<16x32xbf16>, vector<32x128xbf16>, vector<16x128xf32> -> vector<16x128xf32>
    %c0_175 = arith.constant 0 : index
    %c0_176 = arith.constant 0 : index
    %370 = vector.load %arg7[%c0_175, %c0_176] : memref<1x128xf32, #tpu.memory_space<vmem>>, vector<1x128xf32>
    %371 = vector.broadcast %370 : vector<1x128xf32> to vector<16x128xf32>
    %372 = arith.addf %369, %371 : vector<16x128xf32>
    %c0_177 = arith.constant 0 : index
    %c0_178 = arith.constant 0 : index
    %373 = vector.load %arg8[%c0_177, %c0_178] : memref<16x128xf32, #tpu.memory_space<vmem>>, vector<16x128xf32>
    tpu.vector_store %arg8[%c0_177, %c0_178], %372 {strides = array<i32>} : memref<16x128xf32, #tpu.memory_space<vmem>>, vector<16x128xf32>,
    return
  }
  func.func @transform_1(%arg0: i32, %arg1: memref<16xi32, #tpu.memory_space<smem>>) -> (i32, i32) {
    %c0_i32 = arith.constant 0 : i32
    %c0_i32_0 = arith.constant 0 : i32
    %c0_i32_1 = arith.constant 0 : i32
    return %c0_i32, %c0_i32_0 : i32, i32
  }
  func.func @transform_2(%arg0: i32, %arg1: memref<16xi32, #tpu.memory_space<smem>>) -> (i32, i32) {
    %c0_i32 = arith.constant 0 : i32
    %c0_i32_0 = arith.constant 0 : i32
    %c0_i32_1 = arith.constant 0 : i32
    return %c0_i32, %c0_i32_0 : i32, i32
  }
  func.func @transform_3(%arg0: i32, %arg1: memref<16xi32, #tpu.memory_space<smem>>) -> (i32, i32) {
    %c0_i32 = arith.constant 0 : i32
    %c0_i32_0 = arith.constant 0 : i32
    %c0_i32_1 = arith.constant 0 : i32
    return %c0_i32, %c0_i32_0 : i32, i32
  }
  func.func @transform_4(%arg0: i32, %arg1: memref<16xi32, #tpu.memory_space<smem>>) -> (i32, i32) {
    %c0_i32 = arith.constant 0 : i32
    %c0_i32_0 = arith.constant 0 : i32
    %c0_i32_1 = arith.constant 0 : i32
    return %c0_i32, %c0_i32_0 : i32, i32
  }
  func.func @transform_5(%arg0: i32, %arg1: memref<16xi32, #tpu.memory_space<smem>>) -> (i32, i32) {
    %c0_i32 = arith.constant 0 : i32
    %c0_i32_0 = arith.constant 0 : i32
    %c0_i32_1 = arith.constant 0 : i32
    return %c0_i32, %c0_i32_0 : i32, i32
  }
  func.func @transform_6(%arg0: i32, %arg1: memref<16xi32, #tpu.memory_space<smem>>) -> (i32, i32) {
    %c0_i32 = arith.constant 0 : i32
    %c0_i32_0 = arith.constant 0 : i32
    return %arg0, %c0_i32 : i32, i32
  }
}

</mosaic_0001>

<bundles_post_ra>
// kernel: tpu_custom_call.1
= control target key start
LH: loop header
LB: loop body
LE: loop exit
PB: predicated region body
PF: predicated region fallthrough
CT: control target
= control target key end

     0   :  { %s1801_s27 = smov [#allocation8]   ;;  %s2055_s0 = inlined_call_operand.vmem [shape: s32[16], index: 0, kind: input, shape index: {}]   ;;  %s2056_s1 = inlined_call_operand.vmem [shape: f32[64,32], index: 1, kind: input, shape index: {}]   ;;  %s2057_s2 = inlined_call_operand.vmem [shape: bf16[32,128], index: 2, kind: input, shape index: {}]   ;;  %s2058_s3 = inlined_call_operand.vmem [shape: bf16[32,128], index: 3, kind: input, shape index: {}]   ;;  %s2059_s4 = inlined_call_operand.vmem [shape: f32[1,128], index: 4, kind: input, shape index: {}]   ;;  %s2060_s5 = inlined_call_operand.vmem [shape: bf16[32,128], index: 5, kind: input, shape index: {}]   ;;  %s2061_s6 = inlined_call_operand.vmem [shape: f32[1,128], index: 6, kind: input, shape index: {}]   ;;  %s2062_s7 = inlined_call_operand.hbm [shape: f32[16,128], index: 7, kind: output, shape index: {}]  }
   0x1   :  { %s13_s26 = sshll.u32 %s2055_s0, 4  ;;  %s14_s26 = int_to_ptr.vmem [resolvable:$true] %s13_s26 }
   0x2   :  { %16 = dma.vmem_to_smem %s14_s26, 16, %s1801_s27, [#allocation7] }
   0x3   :  { %1765 = dma.done.wait [#allocation7], 16 }
   0x4   :  { %1766 = vsyncadd [#allocation7], 4294967280 }
   0x5   :  { %19 = sfence }
   0x6   :  { %20 = vsyncpa [#allocation10], 0  ;;  %vm36_vm0 = vcmask 254976   ;;  %s40_s28 = sld [smem:[#allocation8]]  ;;  %v1802_v0 = vmov 0.0  }
   0x7   :  { %37 = vst.msk [vmem:[#allocation5] sm:$0x3] %vm36_vm0, %v1802_v0 }
   0x8   :  { %38 = vst.msk [vmem:[#allocation6] sm:$0x3] %vm36_vm0, %v1802_v0 }
   0xc   :  { %s41_s8 = scalar_lea.vmem %s2056_s1, %s40_s28 }
   0xd   :  { %v56_v1 = vld [vmem:[%s41_s8] sm:$0x1] }
   0xe   :  { %57 = vst [vmem:[#allocation2] sm:$0x1] %v56_v1 }
   0xf   :  { %75 = vsyncadd [#allocation3], 16  ;;  %s1576_s0 = sld [smem:[#allocation8 + $0x1]] }
  0x15   :  { %s78_s11 = scalar_lea.vmem %s2056_s1, %s1576_s0 }
  0x16   :  { %v95_v2 = vld [vmem:[%s78_s11] sm:$0x1] }
  0x17   :  { %96 = vst [vmem:[#allocation2 + $0x1] sm:$0x1] %v95_v2 }
  0x18   :  { %114 = vsyncadd [#allocation3 + $0x1], 16  ;;  %s1577_s12 = sld [smem:[#allocation8 + $0x2]] }
  0x1e   :  { %s117_s15 = scalar_lea.vmem %s2056_s1, %s1577_s12 }
  0x1f   :  { %v134_v3 = vld [vmem:[%s117_s15] sm:$0x1] }
  0x20   :  { %135 = vst [vmem:[#allocation2 + $0x2] sm:$0x1] %v134_v3 }
  0x21   :  { %153 = vsyncadd [#allocation3 + $0x2], 16  ;;  %s1578_s16 = sld [smem:[#allocation8 + $0x3]] }
  0x27   :  { %s156_s19 = scalar_lea.vmem %s2056_s1, %s1578_s16 }
  0x28   :  { %v173_v4 = vld [vmem:[%s156_s19] sm:$0x1] }
  0x29   :  { %174 = vst [vmem:[#allocation2 + $0x3] sm:$0x1] %v173_v4 }
  0x2a   :  { %192 = vsyncadd [#allocation3 + $0x3], 16  ;;  %s1579_s20 = sld [smem:[#allocation8 + $0x4]] }
  0x30   :  { %s195_s23 = scalar_lea.vmem %s2056_s1, %s1579_s20 }
  0x31   :  { %v212_v5 = vld [vmem:[%s195_s23] sm:$0x1] }
  0x32   :  { %213 = vst [vmem:[#allocation2 + $0x4] sm:$0x1] %v212_v5 }
  0x33   :  { %231 = vsyncadd [#allocation3 + $0x4], 16  ;;  %s1580_s24 = sld [smem:[#allocation8 + $0x5]] }
  0x39   :  { %s234_s27 = scalar_lea.vmem %s2056_s1, %s1580_s24 }
  0x3a   :  { %v251_v6 = vld [vmem:[%s234_s27] sm:$0x1] }
  0x3b   :  { %252 = vst [vmem:[#allocation2 + $0x5] sm:$0x1] %v251_v6 }
  0x3c   :  { %270 = vsyncadd [#allocation3 + $0x5], 16  ;;  %s1581_s28 = sld [smem:[#allocation8 + $0x6]] }
  0x42   :  { %s273_s8 = scalar_lea.vmem %s2056_s1, %s1581_s28 }
  0x43   :  { %v290_v7 = vld [vmem:[%s273_s8] sm:$0x1] }
  0x44   :  { %291 = vst [vmem:[#allocation2 + $0x6] sm:$0x1] %v290_v7 }
  0x45   :  { %309 = vsyncadd [#allocation3 + $0x6], 16  ;;  %s1582_s0 = sld [smem:[#allocation8 + $0x7]] }
  0x4b   :  { %s312_s11 = scalar_lea.vmem %s2056_s1, %s1582_s0 }
  0x4c   :  { %v329_v8 = vld [vmem:[%s312_s11] sm:$0x1] }
  0x4d   :  { %330 = vst [vmem:[#allocation2 + $0x7] sm:$0x1] %v329_v8 }
  0x4e   :  { %348 = vsyncadd [#allocation3 + $0x7], 16  ;;  %s1583_s12 = sld [smem:[#allocation8 + $0x8]] }
  0x54   :  { %s351_s15 = scalar_lea.vmem %s2056_s1, %s1583_s12 }
  0x55   :  { %v368_v9 = vld [vmem:[%s351_s15] sm:$0x1] }
  0x56   :  { %369 = vst [vmem:[#allocation2 + $0x8] sm:$0x1] %v368_v9 }
  0x57   :  { %387 = vsyncadd [#allocation3 + $0x8], 16  ;;  %s1584_s16 = sld [smem:[#allocation8 + $0x9]] }
  0x5d   :  { %s390_s19 = scalar_lea.vmem %s2056_s1, %s1584_s16 }
  0x5e   :  { %v407_v10 = vld [vmem:[%s390_s19] sm:$0x1] }
  0x5f   :  { %408 = vst [vmem:[#allocation2 + $0x9] sm:$0x1] %v407_v10 }
  0x60   :  { %426 = vsyncadd [#allocation3 + $0x9], 16  ;;  %s1585_s20 = sld [smem:[#allocation8 + $0xa]] }
  0x66   :  { %s429_s23 = scalar_lea.vmem %s2056_s1, %s1585_s20 }
  0x67   :  { %v446_v11 = vld [vmem:[%s429_s23] sm:$0x1] }
  0x68   :  { %447 = vst [vmem:[#allocation2 + $0xa] sm:$0x1] %v446_v11 }
  0x69   :  { %465 = vsyncadd [#allocation3 + $0xa], 16  ;;  %s1586_s24 = sld [smem:[#allocation8 + $0xb]] }
  0x6f   :  { %s468_s27 = scalar_lea.vmem %s2056_s1, %s1586_s24 }
  0x70   :  { %v485_v12 = vld [vmem:[%s468_s27] sm:$0x1] }
  0x71   :  { %486 = vst [vmem:[#allocation2 + $0xb] sm:$0x1] %v485_v12 }
  0x72   :  { %504 = vsyncadd [#allocation3 + $0xb], 16  ;;  %s1587_s28 = sld [smem:[#allocation8 + $0xc]] }
  0x78   :  { %s507_s8 = scalar_lea.vmem %s2056_s1, %s1587_s28 }
  0x79   :  { %v524_v13 = vld [vmem:[%s507_s8] sm:$0x1] }
  0x7a   :  { %525 = vst [vmem:[#allocation2 + $0xc] sm:$0x1] %v524_v13 }
  0x7b   :  { %543 = vsyncadd [#allocation3 + $0xc], 16  ;;  %s1588_s0 = sld [smem:[#allocation8 + $0xd]] }
  0x81   :  { %s546_s11 = scalar_lea.vmem %s2056_s1, %s1588_s0 }
  0x82   :  { %v563_v14 = vld [vmem:[%s546_s11] sm:$0x1] }
  0x83   :  { %564 = vst [vmem:[#allocation2 + $0xd] sm:$0x1] %v563_v14 }
  0x84   :  { %582 = vsyncadd [#allocation3 + $0xd], 16  ;;  %s1589_s12 = sld [smem:[#allocation8 + $0xe]] }
  0x8a   :  { %s585_s15 = scalar_lea.vmem %s2056_s1, %s1589_s12 }
  0x8b   :  { %v602_v15 = vld [vmem:[%s585_s15] sm:$0x1] }
  0x8c   :  { %603 = vst [vmem:[#allocation2 + $0xe] sm:$0x1] %v602_v15 }
  0x8d   :  { %621 = vsyncadd [#allocation3 + $0xe], 16  ;;  %s1590_s16 = sld [smem:[#allocation8 + $0xf]] }
  0x93   :  { %s624_s19 = scalar_lea.vmem %s2056_s1, %s1590_s16 }
  0x94   :  { %v641_v16 = vld [vmem:[%s624_s19] sm:$0x1] }
  0x95   :  { %642 = vst [vmem:[#allocation2 + $0xf] sm:$0x1] %v641_v16 }
  0x96   :  { %660 = vsyncadd [#allocation3 + $0xf], 16 }
  0x97   :  { %1767 = dma.done.wait [#allocation3], 16 }
  0x98   :  { %1768 = vsyncadd [#allocation3], 4294967280 }
  0x99   :  { %1769 = dma.done.wait [#allocation3 + $0x1], 16 }
  0x9a   :  { %1770 = vsyncadd [#allocation3 + $0x1], 4294967280 }
  0x9b   :  { %1771 = dma.done.wait [#allocation3 + $0x2], 16 }
  0x9c   :  { %1772 = vsyncadd [#allocation3 + $0x2], 4294967280 }
  0x9d   :  { %1773 = dma.done.wait [#allocation3 + $0x3], 16 }
  0x9e   :  { %1774 = vsyncadd [#allocation3 + $0x3], 4294967280 }
  0x9f   :  { %1775 = dma.done.wait [#allocation3 + $0x4], 16 }
  0xa0   :  { %1776 = vsyncadd [#allocation3 + $0x4], 4294967280 }
  0xa1   :  { %1777 = dma.done.wait [#allocation3 + $0x5], 16 }
  0xa2   :  { %1778 = vsyncadd [#allocation3 + $0x5], 4294967280 }
  0xa3   :  { %1779 = dma.done.wait [#allocation3 + $0x6], 16 }
  0xa4   :  { %1780 = vsyncadd [#allocation3 + $0x6], 4294967280 }
  0xa5   :  { %1781 = dma.done.wait [#allocation3 + $0x7], 16 }
  0xa6   :  { %1782 = vsyncadd [#allocation3 + $0x7], 4294967280 }
  0xa7   :  { %1783 = dma.done.wait [#allocation3 + $0x8], 16 }
  0xa8   :  { %1784 = vsyncadd [#allocation3 + $0x8], 4294967280 }
  0xa9   :  { %1785 = dma.done.wait [#allocation3 + $0x9], 16 }
  0xaa   :  { %1786 = vsyncadd [#allocation3 + $0x9], 4294967280 }
  0xab   :  { %1787 = dma.done.wait [#allocation3 + $0xa], 16 }
  0xac   :  { %1788 = vsyncadd [#allocation3 + $0xa], 4294967280 }
  0xad   :  { %1789 = dma.done.wait [#allocation3 + $0xb], 16 }
  0xae   :  { %1790 = vsyncadd [#allocation3 + $0xb], 4294967280 }
  0xaf   :  { %1791 = dma.done.wait [#allocation3 + $0xc], 16 }
  0xb0   :  { %1792 = vsyncadd [#allocation3 + $0xc], 4294967280 }
  0xb1   :  { %1793 = dma.done.wait [#allocation3 + $0xd], 16 }
  0xb2   :  { %1794 = vsyncadd [#allocation3 + $0xd], 4294967280 }
  0xb3   :  { %1795 = dma.done.wait [#allocation3 + $0xe], 16 }
  0xb4   :  { %1796 = vsyncadd [#allocation3 + $0xe], 4294967280 }
  0xb5   :  { %1797 = dma.done.wait [#allocation3 + $0xf], 16 }
  0xb6   :  { %1798 = vsyncadd [#allocation3 + $0xf], 4294967280  ;;  %v1650_v17 = vld [vmem:[%s2057_s2 + $0x8] sm:$0xff]  ;;  %v1649_v19 = vld [vmem:[%s2057_s2] sm:$0xff]  ;;  %vm721_vm1 = vcmask 261120   ;;  %v739_v35 = vlaneseq  ;;  %s1804_s27 = smov 32  }
  0xb7   :  { %v1652_v18 = vld [vmem:[%s2058_s3 + $0x8] sm:$0xff]  ;;  %v1651_v20 = vld [vmem:[%s2058_s3] sm:$0xff]  ;;  %731 = vmatpush.bf16.msra.mxu0 %v1650_v17  ;;  %s1805_s28 = smov 96   ;;  %s1806_s11 = smov [#allocation9]  }
  0xb8   :  { %v703_v21 = vld [vmem:[#allocation2] sm:$0xff]  ;;  %768 = vmatpush.bf16.msra.mxu1 %v1652_v18  ;;  %v704_v22 = vld [vmem:[#allocation2 + $0x8] sm:$0xff]  ;;  %837 = vmatpush.bf16.msra.mxu2 %v1652_v18  ;;  %v740_v37 = vand.u32 127, %v739_v35  ;;  %s1373_s14 = sshll.u32 %s2062_s7, 4  ;;  %s1807_s15 = smov 128   ;;  %s1374_s14 = int_to_ptr.hbm [resolvable:$true] %s1373_s14 }
  0xb9   :  { %v744_v23 = vld [vmem:[#allocation5] sm:$0x3]  ;;  %909 = vmatpush.bf16.msra.mxu3 %v1652_v18  ;;  %v705_v24 = vpack.c.bf16 %v704_v22, %v703_v21  ;;  %v745_v50 = vld [vmem:[#allocation6] sm:$0x3]  ;;  %s1808_s16 = smov 8  }
  0xba   :  { %v746_v25 = vpack.c.bf16 %v744_v23, %v744_v23  ;;  %v1919_v26 = vld [vmem:[%s2059_s4] ss:$0 sm:$0xff]  ;;  %vm741_vm2 = vcmp.ge.s32.totalorder %v740_v37, 64  ;;  %vm742_vm3 = vcmp.lt.s32.totalorder %v740_v37, 96  ;;  %s1803_s4 = smov 64  }
  0xbb   :  { %732 = vmatpush.bf16.msra.mxu0 %v1649_v19  ;;  %vm1925_vm5 = vmand %vm741_vm2, %vm742_vm3 }
  0xbc   :  { %769 = vmatpush.bf16.msra.mxu1 %v1651_v20  ;;  %838 = vmatpush.bf16.msra.mxu2 %v1651_v20 }
  0xbd   :  { %910 = vmatpush.bf16.msra.mxu3 %v1651_v20 }
  0xbe   :  { %1599 = vmatmul.msk.bf16.vlgmr.msra.gmra.mxu0 %vm721_vm1, %v705_v24 }
  0xbf   :  { %981 = vmatpush.bf16.msrb.mxu0 %v1652_v18  ;;  %1608 = vmatmul.msk.bf16.vlgmr.msra.gmra.mxu1 %vm721_vm1, %v746_v25 }
  0xc0   :  { %1053 = vmatpush.bf16.msrb.mxu1 %v1652_v18  ;;  %1120 = vmatpush.bf16.msrb.mxu2 %v1652_v18 }
  0xc1   :  { %1191 = vmatpush.bf16.msrb.mxu3 %v1652_v18 }
  0xc3   :  { %982 = vmatpush.bf16.msrb.mxu0 %v1651_v20 }
  0xc4   :  { %1054 = vmatpush.bf16.msrb.mxu1 %v1651_v20  ;;  %1121 = vmatpush.bf16.msrb.mxu2 %v1651_v20 }
  0xc5   :  { %1192 = vmatpush.bf16.msrb.mxu3 %v1651_v20 }
  0xc7   :  { %1262 = vmatpush.bf16.msra.mxu0 %v1652_v18 }
  0xcb   :  { %1263 = vmatpush.bf16.msra.mxu0 %v1651_v20 }
 0x13b   :  { %v734_v27 = vpop.f32.mrf.mxu0 }
 0x13c   :  { %v771_v28 = vpop.f32.mrf.mxu1  ;;  %v1922_v29 = vadd.f32 %v1919_v26, %v734_v27 }
 0x13e   :  { %v775_v30 = vadd.f32 %v771_v28, %v1922_v29 }
 0x140   :  { %v1609_v31 = vmul.f32 -1.442695, %v775_v30 }
 0x142   :  { %1665 = vpow2.f32 %v1609_v31 }
 0x144   :  { %v773_v32 = vpop.f32.mrf.mxu1 }
 0x148   :  { %v1666_v33 = vpop.eup %1665 }
 0x149   :  { %v780_v34 = vadd.f32 1.0, %v1666_v33 }
 0x14b   :  { %1667 = vrcp.f32 %v780_v34  ;;  %v792_v40 = vand.u32 2147483648, %v780_v34  ;;  %v790_v42 = vand.u32 2147483647, %v780_v34  ;;  %vm786_vm6 = vweird.f32 %v780_v34 }
 0x14c   :  { %1669 = vtanh.f32 %v775_v30 }
 0x14d   :  { %v793_v45 = vor.u32 1.1754944e-38, %v792_v40  ;;  %vm791_vm8 = vcmp.eq.f32.partialorder %v790_v42, 8.507059e+37 }
 0x151   :  { %v1668_v36 = vpop.eup %1667 }
 0x152   :  { %v782_v38 = vmul.f32 %v1668_v36, %v780_v34  ;;  %vm787_vm4 = vweird.f32 %v1668_v36  ;;  %v1670_v47 = vpop.eup %1669 }
 0x153   :  { %vm788_vm7 = vmor %vm786_vm6, %vm787_vm4 }
 0x154   :  { %v783_v39 = vsub.f32 1.0, %v782_v38 }
 0x156   :  { %v784_v41 = vmul.f32 %v1668_v36, %v783_v39 }
 0x158   :  { %v785_v44 = vadd.f32 %v1668_v36, %v784_v41 }
 0x15a   :  { %v789_v46 = vsel %vm788_vm7, %v1668_v36, %v785_v44 }
 0x15b   :  { %v794_v48 = vsel %vm791_vm8, %v793_v45, %v789_v46 }
 0x15c   :  { %v796_v49 = vsel %vm1925_vm5, %v1670_v47, %v794_v48 }
 0x15d   :  { %803 = vrot.lane.b32.xlu0 %v796_v49, %s1803_s4 }
 0x165   :  { %798 = vrot.lane.b32.xlu0 %v745_v50, %s1804_s27 }
 0x1cf   :  { %v804_v51 = vpop.permute.xlu0 %803 }
 0x1d0   :  { %v806_v52 = vmul.f32 %v804_v51, %v796_v49 }
 0x1d2   :  { %808 = vrot.lane.b32.xlu1 %v806_v52, %s1804_s27 }
 0x1d7   :  { %v799_v53 = vpop.permute.xlu0 %798 }
 0x1d8   :  { %v801_v54 = vmul.f32 %v799_v53, %v796_v49 }
 0x244   :  { %v809_v55 = vpop.permute.xlu1 %808 }
 0x245   :  { %v811_v56 = vadd.f32 %v809_v55, %v801_v54 }
 0x247   :  { %1671 = vtanh.f32 %v811_v56  ;;  %v870_v19 = vrot.slane %v811_v56, 6 }
 0x24d   :  { %v1672_v57 = vpop.eup %1671 }
 0x24e   :  { %814 = vrot.lane.b32.xlu1 %v1672_v57, %s1803_s4 }
 0x2c0   :  { %v815_v58 = vpop.permute.xlu1 %814 }
 0x2c1   :  { %v1935_v59 = vmul.f32 %v815_v58, %v796_v49 }
 0x2c3   :  { %v824_v60 = vpack.c.bf16 %v1935_v59, %v1935_v59 }
 0x2c5   :  { %826 = vrot.lane.b32.xlu2 %v824_v60, %s1804_s27 }
 0x31f   :  { %v827_v61 = vpop.permute.xlu2 %826 }
 0x320   :  { %1610 = vmatmul.msk.bf16.vlgmr.msra.gmra.mxu2 %vm721_vm1, %v827_v61 }
 0x3a3   :  { %v840_v62 = vpop.f32.mrf.mxu2 }
 0x3a4   :  { %v845_v63 = vrot.slane %v840_v62, 6 }
 0x3a6   :  { %v847_v0 = vadd.f32 %v845_v63, %v1922_v29 }
 0x3a8   :  { %v1611_v1 = vmul.f32 -1.442695, %v847_v0 }
 0x3aa   :  { %1673 = vpow2.f32 %v1611_v1 }
 0x3ab   :  { %v842_v2 = vpop.f32.mrf.mxu2 }
 0x3b0   :  { %v1674_v3 = vpop.eup %1673 }
 0x3b1   :  { %v852_v4 = vadd.f32 1.0, %v1674_v3 }
 0x3b3   :  { %1675 = vrcp.f32 %v852_v4  ;;  %v864_v8 = vand.u32 2147483648, %v852_v4  ;;  %v862_v10 = vand.u32 2147483647, %v852_v4  ;;  %vm858_vm10 = vweird.f32 %v852_v4 }
 0x3b4   :  { %1677 = vtanh.f32 %v847_v0  ;;  %v736_v0 = vpop.f32.mrf.mxu0 }
 0x3b5   :  { %v865_v12 = vor.u32 1.1754944e-38, %v864_v8  ;;  %vm863_vm12 = vcmp.eq.f32.partialorder %v862_v10, 8.507059e+37 }
 0x3b9   :  { %v1676_v5 = vpop.eup %1675 }
 0x3ba   :  { %v854_v6 = vmul.f32 %v1676_v5, %v852_v4  ;;  %vm859_vm9 = vweird.f32 %v1676_v5  ;;  %v1678_v14 = vpop.eup %1677 }
 0x3bb   :  { %vm860_vm11 = vmor %vm858_vm10, %vm859_vm9 }
 0x3bc   :  { %v855_v7 = vsub.f32 1.0, %v854_v6 }
 0x3be   :  { %v856_v9 = vmul.f32 %v1676_v5, %v855_v7 }
 0x3c0   :  { %v857_v11 = vadd.f32 %v1676_v5, %v856_v9 }
 0x3c2   :  { %v861_v13 = vsel %vm860_vm11, %v1676_v5, %v857_v11 }
 0x3c3   :  { %v866_v15 = vsel %vm863_vm12, %v865_v12, %v861_v13 }
 0x3c4   :  { %v868_v16 = vsel %vm1925_vm5, %v1678_v14, %v866_v15 }
 0x3c5   :  { %874 = vrot.lane.b32.xlu2 %v868_v16, %s1803_s4  ;;  %v872_v20 = vmul.f32 %v870_v19, %v868_v16 }
 0x41f   :  { %v875_v17 = vpop.permute.xlu2 %874 }
 0x420   :  { %v877_v18 = vmul.f32 %v875_v17, %v868_v16 }
 0x422   :  { %879 = vrot.lane.b32.xlu0 %v877_v18, %s1804_s27 }
 0x494   :  { %v880_v21 = vpop.permute.xlu0 %879 }
 0x495   :  { %v882_v22 = vadd.f32 %v880_v21, %v872_v20 }
 0x497   :  { %1679 = vtanh.f32 %v882_v22  ;;  %v942_v53 = vrot.slane %v882_v22, 6 }
 0x49d   :  { %v1680_v23 = vpop.eup %1679 }
 0x49e   :  { %885 = vrot.lane.b32.xlu1 %v1680_v23, %s1803_s4 }
 0x510   :  { %v886_v24 = vpop.permute.xlu1 %885 }
 0x511   :  { %v1947_v25 = vmul.f32 %v886_v24, %v868_v16 }
 0x513   :  { %v895_v27 = vpack.c.bf16 %v1947_v25, %v1947_v25 }
 0x515   :  { %v897_v28 = vrot.slane %v895_v27, 1 }
 0x517   :  { %898 = vrot.lane.b32.xlu2 %v897_v28, %s1804_s27 }
 0x571   :  { %v899_v30 = vpop.permute.xlu2 %898 }
 0x572   :  { %1612 = vmatmul.msk.bf16.vlgmr.msra.gmra.mxu3 %vm721_vm1, %v899_v30 }
 0x5f5   :  { %v912_v31 = vpop.f32.mrf.mxu3 }
 0x5f6   :  { %v917_v32 = vrot.slane %v912_v31, 4 }
 0x5f8   :  { %v919_v33 = vadd.f32 %v917_v32, %v1922_v29 }
 0x5fa   :  { %v1613_v34 = vmul.f32 -1.442695, %v919_v33 }
 0x5fc   :  { %1681 = vpow2.f32 %v1613_v34  ;;  %v1978_v34 = vadd.f32 %v1919_v26, %v736_v0 }
 0x5fd   :  { %v914_v35 = vpop.f32.mrf.mxu3 }
 0x602   :  { %v1682_v36 = vpop.eup %1681 }
 0x603   :  { %v924_v37 = vadd.f32 1.0, %v1682_v36 }
 0x605   :  { %1683 = vrcp.f32 %v924_v37  ;;  %v936_v41 = vand.u32 2147483648, %v924_v37  ;;  %v934_v44 = vand.u32 2147483647, %v924_v37  ;;  %vm930_vm14 = vweird.f32 %v924_v37 }
 0x606   :  { %1685 = vtanh.f32 %v919_v33 }
 0x607   :  { %v937_v46 = vor.u32 1.1754944e-38, %v936_v41  ;;  %vm935_vm2 = vcmp.eq.f32.partialorder %v934_v44, 8.507059e+37 }
 0x60b   :  { %v1684_v38 = vpop.eup %1683 }
 0x60c   :  { %v926_v39 = vmul.f32 %v1684_v38, %v924_v37  ;;  %vm931_vm13 = vweird.f32 %v1684_v38  ;;  %v1686_v48 = vpop.eup %1685 }
 0x60d   :  { %vm932_vm15 = vmor %vm930_vm14, %vm931_vm13 }
 0x60e   :  { %v927_v40 = vsub.f32 1.0, %v926_v39 }
 0x610   :  { %v928_v42 = vmul.f32 %v1684_v38, %v927_v40 }
 0x612   :  { %v929_v45 = vadd.f32 %v1684_v38, %v928_v42 }
 0x614   :  { %v933_v47 = vsel %vm932_vm15, %v1684_v38, %v929_v45 }
 0x615   :  { %v938_v49 = vsel %vm935_vm2, %v937_v46, %v933_v47 }
 0x616   :  { %v940_v50 = vsel %vm1925_vm5, %v1686_v48, %v938_v49 }
 0x617   :  { %946 = vrot.lane.b32.xlu0 %v940_v50, %s1803_s4  ;;  %v944_v54 = vmul.f32 %v942_v53, %v940_v50 }
 0x689   :  { %v947_v51 = vpop.permute.xlu0 %946 }
 0x68a   :  { %v949_v52 = vmul.f32 %v947_v51, %v940_v50 }
 0x68c   :  { %951 = vrot.lane.b32.xlu1 %v949_v52, %s1804_s27 }
 0x6fe   :  { %v952_v55 = vpop.permute.xlu1 %951 }
 0x6ff   :  { %v954_v56 = vadd.f32 %v952_v55, %v944_v54 }
 0x701   :  { %1687 = vtanh.f32 %v954_v56  ;;  %v1014_v21 = vrot.slane %v954_v56, 6 }
 0x707   :  { %v1688_v57 = vpop.eup %1687 }
 0x708   :  { %957 = vrot.lane.b32.xlu2 %v1688_v57, %s1803_s4 }
 0x762   :  { %v958_v58 = vpop.permute.xlu2 %957 }
 0x763   :  { %v1959_v60 = vmul.f32 %v958_v58, %v940_v50 }
 0x765   :  { %v967_v61 = vpack.c.bf16 %v1959_v60, %v1959_v60 }
 0x767   :  { %v969_v62 = vrot.slane %v967_v61, 2 }
 0x769   :  { %970 = vrot.lane.b32.xlu0 %v969_v62, %s1804_s27 }
 0x7db   :  { %v971_v63 = vpop.permute.xlu0 %970 }
 0x7dc   :  { %1614 = vmatmul.msk.bf16.vlgmr.msrb.gmra.mxu0 %vm721_vm1, %v971_v63 }
 0x859   :  { %v984_v1 = vpop.f32.mrf.mxu0 }
 0x85a   :  { %v989_v2 = vrot.slane %v984_v1, 2 }
 0x85c   :  { %v991_v3 = vadd.f32 %v989_v2, %v1922_v29 }
 0x85e   :  { %v1615_v4 = vmul.f32 -1.442695, %v991_v3 }
 0x860   :  { %1689 = vpow2.f32 %v1615_v4 }
 0x861   :  { %v986_v5 = vpop.f32.mrf.mxu0 }
 0x866   :  { %v1690_v6 = vpop.eup %1689 }
 0x867   :  { %v996_v7 = vadd.f32 1.0, %v1690_v6 }
 0x869   :  { %1691 = vrcp.f32 %v996_v7  ;;  %v1008_v11 = vand.u32 2147483648, %v996_v7  ;;  %v1006_v13 = vand.u32 2147483647, %v996_v7  ;;  %vm1002_vm4 = vweird.f32 %v996_v7 }
 0x86a   :  { %1693 = vtanh.f32 %v991_v3 }
 0x86b   :  { %v1009_v15 = vor.u32 1.1754944e-38, %v1008_v11  ;;  %vm1007_vm7 = vcmp.eq.f32.partialorder %v1006_v13, 8.507059e+37 }
 0x86f   :  { %v1692_v8 = vpop.eup %1691 }
 0x870   :  { %v998_v9 = vmul.f32 %v1692_v8, %v996_v7  ;;  %vm1003_vm3 = vweird.f32 %v1692_v8  ;;  %v1694_v29 = vpop.eup %1693 }
 0x871   :  { %vm1004_vm6 = vmor %vm1002_vm4, %vm1003_vm3 }
 0x872   :  { %v999_v10 = vsub.f32 1.0, %v998_v9 }
 0x874   :  { %v1000_v12 = vmul.f32 %v1692_v8, %v999_v10 }
 0x876   :  { %v1001_v14 = vadd.f32 %v1692_v8, %v1000_v12 }
 0x878   :  { %v1005_v16 = vsel %vm1004_vm6, %v1692_v8, %v1001_v14 }
 0x879   :  { %v1010_v17 = vsel %vm1007_vm7, %v1009_v15, %v1005_v16 }
 0x87a   :  { %v1012_v18 = vsel %vm1925_vm5, %v1694_v29, %v1010_v17 }
 0x87b   :  { %1018 = vrot.lane.b32.xlu1 %v1012_v18, %s1803_s4  ;;  %v1016_v22 = vmul.f32 %v1014_v21, %v1012_v18 }
 0x8ed   :  { %v1019_v19 = vpop.permute.xlu1 %1018 }
 0x8ee   :  { %v1021_v20 = vmul.f32 %v1019_v19, %v1012_v18 }
 0x8f0   :  { %1023 = vrot.lane.b32.xlu2 %v1021_v20, %s1804_s27 }
 0x94a   :  { %v1024_v23 = vpop.permute.xlu2 %1023 }
 0x94b   :  { %v1026_v24 = vadd.f32 %v1024_v23, %v1016_v22 }
 0x94d   :  { %1695 = vtanh.f32 %v1026_v24  ;;  %v1083_v55 = vrot.slane %v1026_v24, 6 }
 0x953   :  { %v1696_v27 = vpop.eup %1695 }
 0x954   :  { %1029 = vrot.lane.b32.xlu0 %v1696_v27, %s1803_s4 }
 0x9c6   :  { %v1030_v28 = vpop.permute.xlu0 %1029 }
 0x9c7   :  { %v1971_v30 = vmul.f32 %v1030_v28, %v1012_v18 }
 0x9c9   :  { %v1039_v31 = vpack.c.bf16 %v1971_v30, %v1971_v30 }
 0x9cb   :  { %v1041_v32 = vrot.slane %v1039_v31, 3 }
 0x9cd   :  { %1042 = vrot.lane.b32.xlu1 %v1041_v32, %s1804_s27 }
 0xa3f   :  { %v1043_v33 = vpop.permute.xlu1 %1042 }
 0xa40   :  { %1616 = vmatmul.msk.bf16.vlgmr.msrb.gmra.mxu1 %vm721_vm1, %v1043_v33 }
 0xabd   :  { %v1056_v35 = vpop.f32.mrf.mxu1 }
 0xabe   :  { %v1060_v36 = vadd.f32 %v1056_v35, %v1978_v34 }
 0xac0   :  { %v1617_v37 = vmul.f32 -1.442695, %v1060_v36 }
 0xac2   :  { %1697 = vpow2.f32 %v1617_v37 }
 0xac5   :  { %v1058_v38 = vpop.f32.mrf.mxu1 }
 0xac8   :  { %v1698_v39 = vpop.eup %1697 }
 0xac9   :  { %v1065_v40 = vadd.f32 1.0, %v1698_v39 }
 0xacb   :  { %1699 = vrcp.f32 %v1065_v40  ;;  %v1077_v45 = vand.u32 2147483648, %v1065_v40  ;;  %v1075_v47 = vand.u32 2147483647, %v1065_v40  ;;  %vm1071_vm9 = vweird.f32 %v1065_v40 }
 0xacc   :  { %1701 = vtanh.f32 %v1060_v36 }
 0xacd   :  { %v1078_v26 = vor.u32 1.1754944e-38, %v1077_v45  ;;  %vm1076_vm11 = vcmp.eq.f32.partialorder %v1075_v47, 8.507059e+37 }
 0xad1   :  { %v1700_v41 = vpop.eup %1699 }
 0xad2   :  { %v1067_v42 = vmul.f32 %v1700_v41, %v1065_v40  ;;  %vm1072_vm8 = vweird.f32 %v1700_v41  ;;  %v1702_v50 = vpop.eup %1701 }
 0xad3   :  { %vm1073_vm10 = vmor %vm1071_vm9, %vm1072_vm8 }
 0xad4   :  { %v1068_v44 = vsub.f32 1.0, %v1067_v42 }
 0xad6   :  { %v1069_v46 = vmul.f32 %v1700_v41, %v1068_v44 }
 0xad8   :  { %v1070_v48 = vadd.f32 %v1700_v41, %v1069_v46 }
 0xada   :  { %v1074_v49 = vsel %vm1073_vm10, %v1700_v41, %v1070_v48 }
 0xadb   :  { %v1079_v51 = vsel %vm1076_vm11, %v1078_v26, %v1074_v49  ;;  %vm965_vm11 = vcmask 259076  }
 0xadc   :  { %v1081_v52 = vsel %vm1925_vm5, %v1702_v50, %v1079_v51 }
 0xadd   :  { %1087 = vrot.lane.b32.xlu2 %v1081_v52, %s1803_s4  ;;  %v1085_v56 = vmul.f32 %v1083_v55, %v1081_v52 }
 0xb37   :  { %v1088_v53 = vpop.permute.xlu2 %1087 }
 0xb38   :  { %v1090_v54 = vmul.f32 %v1088_v53, %v1081_v52 }
 0xb3a   :  { %1092 = vrot.lane.b32.xlu0 %v1090_v54, %s1804_s27 }
 0xbac   :  { %v1093_v57 = vpop.permute.xlu0 %1092 }
 0xbad   :  { %v1095_v58 = vadd.f32 %v1093_v57, %v1085_v56 }
 0xbaf   :  { %1703 = vtanh.f32 %v1095_v58  ;;  %v1153_v22 = vrot.slane %v1095_v58, 6 }
 0xbb5   :  { %v1704_v61 = vpop.eup %1703 }
 0xbb6   :  { %1098 = vrot.lane.b32.xlu1 %v1704_v61, %s1803_s4 }
 0xc28   :  { %v1099_v62 = vpop.permute.xlu1 %1098 }
 0xc29   :  { %v1986_v63 = vmul.f32 %v1099_v62, %v1081_v52 }
 0xc2b   :  { %v1107_v0 = vpack.c.bf16 %v1986_v63, %v1986_v63 }
 0xc2d   :  { %1109 = vrot.lane.b32.xlu2 %v1107_v0, %s1804_s27 }
 0xc87   :  { %v1110_v1 = vpop.permute.xlu2 %1109 }
 0xc88   :  { %1618 = vmatmul.msk.bf16.vlgmr.msrb.gmra.mxu2 %vm721_vm1, %v1110_v1 }
 0xd0b   :  { %v1123_v2 = vpop.f32.mrf.mxu2 }
 0xd0c   :  { %v1128_v3 = vrot.slane %v1123_v2, 6 }
 0xd0e   :  { %v1130_v4 = vadd.f32 %v1128_v3, %v1978_v34 }
 0xd10   :  { %v1619_v5 = vmul.f32 -1.442695, %v1130_v4 }
 0xd12   :  { %1705 = vpow2.f32 %v1619_v5 }
 0xd13   :  { %v1125_v6 = vpop.f32.mrf.mxu2 }
 0xd18   :  { %v1706_v7 = vpop.eup %1705 }
 0xd19   :  { %v1135_v8 = vadd.f32 1.0, %v1706_v7 }
 0xd1b   :  { %1707 = vrcp.f32 %v1135_v8  ;;  %v1147_v12 = vand.u32 2147483648, %v1135_v8  ;;  %v1145_v14 = vand.u32 2147483647, %v1135_v8  ;;  %vm1141_vm13 = vweird.f32 %v1135_v8 }
 0xd1c   :  { %1709 = vtanh.f32 %v1130_v4 }
 0xd1d   :  { %v1148_v16 = vor.u32 1.1754944e-38, %v1147_v12  ;;  %vm1146_vm15 = vcmp.eq.f32.partialorder %v1145_v14, 8.507059e+37 }
 0xd21   :  { %v1708_v9 = vpop.eup %1707 }
 0xd22   :  { %v1137_v10 = vmul.f32 %v1708_v9, %v1135_v8  ;;  %vm1142_vm12 = vweird.f32 %v1708_v9  ;;  %v1710_v17 = vpop.eup %1709 }
 0xd23   :  { %vm1143_vm14 = vmor %vm1141_vm13, %vm1142_vm12  ;;  %vm893_vm12 = vcmask 257026  }
 0xd24   :  { %v1138_v11 = vsub.f32 1.0, %v1137_v10 }
 0xd26   :  { %v1139_v13 = vmul.f32 %v1708_v9, %v1138_v11 }
 0xd28   :  { %v1140_v15 = vadd.f32 %v1708_v9, %v1139_v13 }
 0xd2a   :  { %v1144_v29 = vsel %vm1143_vm14, %v1708_v9, %v1140_v15 }
 0xd2b   :  { %v1149_v18 = vsel %vm1146_vm15, %v1148_v16, %v1144_v29 }
 0xd2c   :  { %v1151_v19 = vsel %vm1925_vm5, %v1710_v17, %v1149_v18 }
 0xd2d   :  { %1157 = vrot.lane.b32.xlu0 %v1151_v19, %s1803_s4  ;;  %v1155_v23 = vmul.f32 %v1153_v22, %v1151_v19 }
 0xd9f   :  { %v1158_v20 = vpop.permute.xlu0 %1157 }
 0xda0   :  { %v1160_v21 = vmul.f32 %v1158_v20, %v1151_v19 }
 0xda2   :  { %1162 = vrot.lane.b32.xlu1 %v1160_v21, %s1804_s27 }
 0xe14   :  { %v1163_v24 = vpop.permute.xlu1 %1162 }
 0xe15   :  { %v1165_v27 = vadd.f32 %v1163_v24, %v1155_v23 }
 0xe17   :  { %1711 = vtanh.f32 %v1165_v27  ;;  %v1224_v58 = vrot.slane %v1165_v27, 6 }
 0xe1d   :  { %v1712_v28 = vpop.eup %1711 }
 0xe1e   :  { %1168 = vrot.lane.b32.xlu2 %v1712_v28, %s1803_s4 }
 0xe78   :  { %v1169_v31 = vpop.permute.xlu2 %1168 }
 0xe79   :  { %v1998_v32 = vmul.f32 %v1169_v31, %v1151_v19 }
 0xe7b   :  { %v1177_v33 = vpack.c.bf16 %v1998_v32, %v1998_v32 }
 0xe7d   :  { %v1179_v35 = vrot.slane %v1177_v33, 1 }
 0xe7f   :  { %1180 = vrot.lane.b32.xlu0 %v1179_v35, %s1804_s27 }
 0xef1   :  { %v1181_v36 = vpop.permute.xlu0 %1180 }
 0xef2   :  { %1620 = vmatmul.msk.bf16.vlgmr.msrb.gmra.mxu3 %vm721_vm1, %v1181_v36 }
 0xf75   :  { %v1194_v37 = vpop.f32.mrf.mxu3 }
 0xf76   :  { %v1199_v38 = vrot.slane %v1194_v37, 4 }
 0xf78   :  { %v1201_v39 = vadd.f32 %v1199_v38, %v1978_v34 }
 0xf7a   :  { %v1621_v40 = vmul.f32 -1.442695, %v1201_v39 }
 0xf7c   :  { %1713 = vpow2.f32 %v1621_v40 }
 0xf7d   :  { %v1196_v41 = vpop.f32.mrf.mxu3 }
 0xf82   :  { %v1714_v42 = vpop.eup %1713 }
 0xf83   :  { %v1206_v44 = vadd.f32 1.0, %v1714_v42 }
 0xf85   :  { %1715 = vrcp.f32 %v1206_v44  ;;  %v1218_v48 = vand.u32 2147483648, %v1206_v44  ;;  %v1216_v49 = vand.u32 2147483647, %v1206_v44  ;;  %vm1212_vm3 = vweird.f32 %v1206_v44 }
 0xf86   :  { %1717 = vtanh.f32 %v1201_v39 }
 0xf87   :  { %v1219_v51 = vor.u32 1.1754944e-38, %v1218_v48  ;;  %vm1217_vm6 = vcmp.eq.f32.partialorder %v1216_v49, 8.507059e+37 }
 0xf8b   :  { %v1716_v45 = vpop.eup %1715 }
 0xf8c   :  { %v1208_v46 = vmul.f32 %v1716_v45, %v1206_v44  ;;  %vm1213_vm2 = vweird.f32 %v1716_v45  ;;  %v1718_v53 = vpop.eup %1717 }
 0xf8d   :  { %vm1214_vm4 = vmor %vm1212_vm3, %vm1213_vm2 }
 0xf8e   :  { %v1209_v47 = vsub.f32 1.0, %v1208_v46 }
 0xf90   :  { %v1210_v26 = vmul.f32 %v1716_v45, %v1209_v47  ;;  %v1664_v47 = vld [vmem:[%s2061_s6] ss:$0 sm:$0xff] }
 0xf92   :  { %v1211_v50 = vadd.f32 %v1716_v45, %v1210_v26 }
 0xf94   :  { %v1215_v52 = vsel %vm1214_vm4, %v1716_v45, %v1211_v50 }
 0xf95   :  { %v1220_v54 = vsel %vm1217_vm6, %v1219_v51, %v1215_v52 }
 0xf96   :  { %v1222_v55 = vsel %vm1925_vm5, %v1718_v53, %v1220_v54 }
 0xf97   :  { %1228 = vrot.lane.b32.xlu1 %v1222_v55, %s1803_s4  ;;  %v1226_v61 = vmul.f32 %v1224_v58, %v1222_v55 }
0x1009   :  { %v1229_v56 = vpop.permute.xlu1 %1228 }
0x100a   :  { %v1231_v57 = vmul.f32 %v1229_v56, %v1222_v55 }
0x100c   :  { %1233 = vrot.lane.b32.xlu2 %v1231_v57, %s1804_s27 }
0x1066   :  { %v1234_v62 = vpop.permute.xlu2 %1233 }
0x1067   :  { %v1236_v0 = vadd.f32 %v1234_v62, %v1226_v61 }
0x1069   :  { %1719 = vtanh.f32 %v1236_v0 }
0x106f   :  { %v1720_v1 = vpop.eup %1719 }
0x1070   :  { %1239 = vrot.lane.b32.xlu0 %v1720_v1, %s1803_s4 }
0x10e2   :  { %v1240_v2 = vpop.permute.xlu0 %1239 }
0x10e3   :  { %v1242_v3 = vmul.f32 %v1240_v2, %v1222_v55 }
0x10e5   :  { %v1248_v4 = vpack.c.bf16 %v1242_v3, %v1242_v3 }
0x10e7   :  { %v1250_v5 = vrot.slane %v1248_v4, 2 }
0x10e9   :  { %1251 = vrot.lane.b32.xlu1 %v1250_v5, %s1804_s27 }
0x115b   :  { %v1252_v6 = vpop.permute.xlu1 %1251 }
0x115c   :  { %1622 = vmatmul.msk.bf16.vlgmr.msra.gmra.mxu0 %vm721_vm1, %v1252_v6 }
0x11d9   :  { %v1265_v7 = vpop.f32.mrf.mxu0 }
0x11da   :  { %v1270_v8 = vrot.slane %v1265_v7, 2 }
0x11dc   :  { %v1272_v9 = vadd.f32 %v1270_v8, %v1978_v34 }
0x11de   :  { %v1623_v10 = vmul.f32 -1.442695, %v1272_v9 }
0x11e0   :  { %1721 = vpow2.f32 %v1623_v10 }
0x11e1   :  { %v1267_v11 = vpop.f32.mrf.mxu0 }
0x11e6   :  { %v1722_v12 = vpop.eup %1721 }
0x11e7   :  { %v1277_v13 = vadd.f32 1.0, %v1722_v12 }
0x11e9   :  { %1723 = vrcp.f32 %v1277_v13  ;;  %v1289_v29 = vand.u32 2147483648, %v1277_v13  ;;  %v1287_v18 = vand.u32 2147483647, %v1277_v13  ;;  %vm1283_vm8 = vweird.f32 %v1277_v13 }
0x11ea   :  { %1725 = vtanh.f32 %v1272_v9 }
0x11eb   :  { %v1290_v20 = vor.u32 1.1754944e-38, %v1289_v29  ;;  %vm1288_vm10 = vcmp.eq.f32.partialorder %v1287_v18, 8.507059e+37 }
0x11ef   :  { %v1724_v14 = vpop.eup %1723 }
0x11f0   :  { %v1279_v15 = vmul.f32 %v1724_v14, %v1277_v13  ;;  %vm1284_vm7 = vweird.f32 %v1724_v14  ;;  %v1726_v34 = vpop.eup %1725 }
0x11f1   :  { %vm1285_vm9 = vmor %vm1283_vm8, %vm1284_vm7 }
0x11f2   :  { %v1280_v16 = vsub.f32 1.0, %v1279_v15 }
0x11f4   :  { %v1281_v17 = vmul.f32 %v1724_v14, %v1280_v16 }
0x11f6   :  { %v1282_v19 = vadd.f32 %v1724_v14, %v1281_v17 }
0x11f8   :  { %v1286_v21 = vsel %vm1285_vm9, %v1724_v14, %v1282_v19 }
0x11f9   :  { %v1291_v22 = vsel %vm1288_vm10, %v1290_v20, %v1286_v21 }
0x11fa   :  { %v1293_v23 = vsel %vm1925_vm5, %v1726_v34, %v1291_v22  ;;  %vm1037_vm5 = vcmask 261126  }
0x11fb   :  { %1299 = vrot.lane.b32.xlu2 %v1293_v23, %s1803_s4 }
0x1203   :  { %819 = vrot.lane.b32.xlu2 %v1935_v59, %s1804_s27 }
0x120b   :  { %1034 = vrot.lane.b32.xlu2 %v1971_v30, %s1804_s27  ;;  %v1295_v30 = vrot.slane %v1236_v0, 6 }
0x120d   :  { %v1297_v31 = vmul.f32 %v1295_v30, %v1293_v23 }
0x1213   :  { %1244 = vrot.lane.b32.xlu2 %v1242_v3, %s1804_s27 }
0x1255   :  { %v1300_v24 = vpop.permute.xlu2 %1299 }
0x1256   :  { %v1302_v27 = vmul.f32 %v1300_v24, %v1293_v23 }
0x1258   :  { %1304 = vrot.lane.b32.xlu0 %v1302_v27, %s1804_s27 }
0x125d   :  { %v820_v28 = vpop.permute.xlu2 %819 }
0x125e   :  { %823 = vst.msk [vmem:[#allocation4] sm:$0x3] %vm36_vm0, %v820_v28 }
0x1260   :  { %890 = vrot.lane.b32.xlu0 %v1947_v25, %s1804_s27 }
0x1265   :  { %v1035_v43 = vpop.permute.xlu2 %1034 }
0x1266   :  { %1038 = vst.msk [vmem:[#allocation4] sm:$0xc0] %vm1037_vm5, %v1035_v43 }
0x1268   :  { %1103 = vrot.lane.b32.xlu0 %v1986_v63, %s1804_s27  ;;  %v1654_v63 = vld [vmem:[%s2060_s5 + $0x8] sm:$0xff] }
0x1269   :  { %1357 = vmatpush.bf16.msra.mxu1 %v1654_v63 }
0x126d   :  { %v1245_v59 = vpop.permute.xlu2 %1244 }
0x126e   :  { %1247 = vst.msk [vmem:[#allocation4 + $0x8] sm:$0x30] %vm965_vm11, %v1245_v59 }
0x12ca   :  { %v1305_v33 = vpop.permute.xlu0 %1304 }
0x12cb   :  { %v1307_v35 = vadd.f32 %v1305_v33, %v1297_v31 }
0x12cd   :  { %1727 = vtanh.f32 %v1307_v35 }
0x12d2   :  { %v891_v36 = vpop.permute.xlu0 %890 }
0x12d3   :  { %v1728_v37 = vpop.eup %1727  ;;  %894 = vst.msk [vmem:[#allocation4] sm:$0xc] %vm893_vm12, %v891_v36 }
0x12d4   :  { %1310 = vrot.lane.b32.xlu1 %v1728_v37, %s1803_s4 }
0x12da   :  { %v1104_v25 = vpop.permute.xlu0 %1103 }
0x12db   :  { %1106 = vst.msk [vmem:[#allocation4 + $0x8] sm:$0x3] %vm36_vm0, %v1104_v25 }
0x12dc   :  { %962 = vrot.lane.b32.xlu1 %v1959_v60, %s1804_s27 }
0x12e4   :  { %1173 = vrot.lane.b32.xlu1 %v1998_v32, %s1804_s27  ;;  %v1653_v32 = vld [vmem:[%s2060_s5] sm:$0xff]  ;;  %s1371_s5 = sshll.u32 %s1806_s11, 4  ;;  %s1372_s5 = int_to_ptr.vmem [resolvable:$true] %s1371_s5 }
0x12e5   :  { %1358 = vmatpush.bf16.msra.mxu1 %v1653_v32 }
0x12ec   :  { %1321 = vrot.lane.b32.xlu1 %v1307_v35, %s1805_s28 }
0x1346   :  { %v1311_v38 = vpop.permute.xlu1 %1310 }
0x1347   :  { %v1313_v39 = vmul.f32 %v1311_v38, %v1293_v23 }
0x1349   :  { %1315 = vrot.lane.b32.xlu0 %v1313_v39, %s1804_s27 }
0x134e   :  { %v963_v40 = vpop.permute.xlu1 %962 }
0x134f   :  { %966 = vst.msk [vmem:[#allocation4] sm:$0x30] %vm965_vm11, %v963_v40 }
0x1356   :  { %v1174_v41 = vpop.permute.xlu1 %1173  ;;  %v1325_v44 = vld [vmem:[#allocation4] sm:$0xff] }
0x1357   :  { %1176 = vst.msk [vmem:[#allocation4 + $0x8] sm:$0xc] %vm893_vm12, %v1174_v41 }
0x135e   :  { %v1322_v60 = vpop.permute.xlu1 %1321 }
0x135f   :  { %1324 = vst.msk [vmem:[#allocation6 - $0x6] sm:$0xc0] %vm1037_vm5, %v1322_v60 }
0x13bb   :  { %v1316_v42 = vpop.permute.xlu0 %1315 }
0x13bc   :  { %1318 = vst.msk [vmem:[#allocation4 + $0x8] sm:$0xc0] %vm1037_vm5, %v1316_v42 }
0x13bd   :  { %1319 = vst.msk [vmem:[#allocation5 - $0x6] sm:$0xc0] %vm1037_vm5, %v1316_v42 }
0x13c3   :  { %v1326_v45 = vld [vmem:[#allocation4 + $0x8] sm:$0xff] }
0x13c4   :  { %v1327_v46 = vpack.c.bf16 %v1326_v45, %v1325_v44 }
0x13c6   :  { %1632 = vmatmul.msk.bf16.vlgmr.msra.gmra.mxu1 %vm721_vm1, %v1327_v46 }
0x1443   :  { %v1360_v48 = vpop.f32.mrf.mxu1 }
0x1444   :  { %v1361_v26 = vadd.f32 %v1664_v47, %v1360_v48 }
0x1446   :  { %1365 = vst [vmem:[#allocation9] sm:$0xff] %v1361_v26 }
0x144b   :  { %v1362_v49 = vpop.f32.mrf.mxu1 }
0x144c   :  { %v1363_v50 = vadd.f32 %v1664_v47, %v1362_v49 }
0x144e   :  { %1366 = vst [vmem:[#allocation9 + $0x8] sm:$0xff] %v1363_v50 }
0x144f   :  { %1379 = dma.vmem_to_hbm [thread:$0]  %s1372_s5, 256, %s1374_s14, [#allocation10], %s1807_s15, %s1807_s15, %s1808_s16  }
0x1450   :  { %1799 = dma.done.wait [#allocation10], 256  }
0x1451   :  { %1800 = vsyncadd [#allocation10], 4294967040 }
0x1452   :  { %1384 = vsyncpa [#allocation10], 1 }
0x1453   :  { %1385 = vsyncmov [#allocation3] }
0x1456   :  { %s1386_s6 = vpop.sfrf %1385 }
0x1457   :  { %p1633_p0 = scmp.ne.s32.totalorder %s1386_s6, 0 }
0x1459   :  { %1390 = shalt.err (%p1633_p0)  }
0x145a   :  { %1392 = vsyncmov [#allocation3 + $0x1] }
0x145d   :  { %s1393_s17 = vpop.sfrf %1392 }
0x145e   :  { %p1634_p1 = scmp.ne.s32.totalorder %s1393_s17, 0 }
0x1460   :  { %1397 = shalt.err (%p1634_p1)  }
0x1461   :  { %1399 = vsyncmov [#allocation3 + $0x2] }
0x1464   :  { %s1400_s7 = vpop.sfrf %1399 }
0x1465   :  { %p1635_p2 = scmp.ne.s32.totalorder %s1400_s7, 0 }
0x1467   :  { %1404 = shalt.err (%p1635_p2)  }
0x1468   :  { %1406 = vsyncmov [#allocation3 + $0x3] }
0x146b   :  { %s1407_s18 = vpop.sfrf %1406 }
0x146c   :  { %p1636_p3 = scmp.ne.s32.totalorder %s1407_s18, 0 }
0x146e   :  { %1411 = shalt.err (%p1636_p3)  }
0x146f   :  { %1413 = vsyncmov [#allocation3 + $0x4] }
0x1472   :  { %s1414_s19 = vpop.sfrf %1413 }
0x1473   :  { %p1637_p4 = scmp.ne.s32.totalorder %s1414_s19, 0 }
0x1475   :  { %1418 = shalt.err (%p1637_p4)  }
0x1476   :  { %1420 = vsyncmov [#allocation3 + $0x5] }
0x1479   :  { %s1421_s1 = vpop.sfrf %1420 }
0x147a   :  { %p1638_p5 = scmp.ne.s32.totalorder %s1421_s1, 0 }
0x147c   :  { %1425 = shalt.err (%p1638_p5)  }
0x147d   :  { %1427 = vsyncmov [#allocation3 + $0x6] }
0x1480   :  { %s1428_s20 = vpop.sfrf %1427 }
0x1481   :  { %p1639_p6 = scmp.ne.s32.totalorder %s1428_s20, 0 }
0x1483   :  { %1432 = shalt.err (%p1639_p6)  }
0x1484   :  { %1434 = vsyncmov [#allocation3 + $0x7] }
0x1487   :  { %s1435_s21 = vpop.sfrf %1434 }
0x1488   :  { %p1640_p7 = scmp.ne.s32.totalorder %s1435_s21, 0 }
0x148a   :  { %1439 = shalt.err (%p1640_p7)  }
0x148b   :  { %1441 = vsyncmov [#allocation3 + $0x8] }
0x148e   :  { %s1442_s22 = vpop.sfrf %1441 }
0x148f   :  { %p1641_p8 = scmp.ne.s32.totalorder %s1442_s22, 0 }
0x1491   :  { %1446 = shalt.err (%p1641_p8)  }
0x1492   :  { %1448 = vsyncmov [#allocation3 + $0x9] }
0x1495   :  { %s1449_s23 = vpop.sfrf %1448 }
0x1496   :  { %p1642_p9 = scmp.ne.s32.totalorder %s1449_s23, 0 }
0x1498   :  { %1453 = shalt.err (%p1642_p9)  }
0x1499   :  { %1455 = vsyncmov [#allocation3 + $0xa] }
0x149c   :  { %s1456_s24 = vpop.sfrf %1455 }
0x149d   :  { %p1643_p10 = scmp.ne.s32.totalorder %s1456_s24, 0 }
0x149f   :  { %1460 = shalt.err (%p1643_p10)  }
0x14a0   :  { %1462 = vsyncmov [#allocation3 + $0xb] }
0x14a3   :  { %s1463_s25 = vpop.sfrf %1462 }
0x14a4   :  { %p1644_p11 = scmp.ne.s32.totalorder %s1463_s25, 0 }
0x14a6   :  { %1467 = shalt.err (%p1644_p11)  }
0x14a7   :  { %1469 = vsyncmov [#allocation3 + $0xc] }
0x14aa   :  { %s1470_s26 = vpop.sfrf %1469 }
0x14ab   :  { %p1645_p12 = scmp.ne.s32.totalorder %s1470_s26, 0 }
0x14ad   :  { %1474 = shalt.err (%p1645_p12)  }
0x14ae   :  { %1476 = vsyncmov [#allocation3 + $0xd] }
0x14b1   :  { %s1477_s2 = vpop.sfrf %1476 }
0x14b2   :  { %p1646_p13 = scmp.ne.s32.totalorder %s1477_s2, 0 }
0x14b4   :  { %1481 = shalt.err (%p1646_p13)  }
0x14b5   :  { %1483 = vsyncmov [#allocation3 + $0xe] }
0x14b8   :  { %s1484_s3 = vpop.sfrf %1483 }
0x14b9   :  { %p1647_p0 = scmp.ne.s32.totalorder %s1484_s3, 0 }
0x14bb   :  { %1488 = shalt.err (%p1647_p0)  }
0x14bc   :  { %1490 = vsyncmov [#allocation3 + $0xf] }
0x14bf   :  { %s1491_s4 = vpop.sfrf %1490 }
0x14c0   :  { %p1648_p1 = scmp.ne.s32.totalorder %s1491_s4, 0 }
0x14c2   :  { %1495 = shalt.err (%p1648_p1)  }

</bundles_post_ra>
